<compile_context>
chip_gen: v5e
topology: v5e:2x2
jax: 0.10.0
libtpu: 0.0.40
codegen_flags: <defaults>
</compile_context>

<pallas_src>
import jax
import jax.numpy as jnp
import numpy as np
from jax.experimental import pallas as pl
from jax.experimental.pallas import tpu as pltpu

INPUT_DIM = 6
HIDDEN_DIM = 32           # small hidden dim for the demo (module default is 128)
OUT_DIM = 100
OUT_PAD = 128             # lane-dense output width (sliced back to 100 outside)
FC_PAD = 128              # lane-dense fc1 width (real width is H//2 = 16)
BATCH = 2
SEQ = 8

# ---- packed weight-slab row layout (single (SLAB_ROWS, 8H) f32 input) ----------
DIN_PAD = 8                                   # x padded to 8 cols; col INPUT_DIM is 1.0
R_REC   = DIN_PAD                             # fused recurrent weight (2H rows)
R_FC1W  = R_REC + 2 * HIDDEN_DIM              # fc1 weight over packed [h0|h1] (2H rows)
R_FC1B  = R_FC1W + 2 * HIDDEN_DIM             # fc1 bias row
R_FC2W  = R_FC1B + 8                          # fc2 weight (FC_PAD rows)
R_FC2B  = R_FC2W + FC_PAD                     # fc2 bias row
SLAB_ROWS = R_FC2B + 8                        # 280 rows (multiple of 8)


def sohlstm_kernel(x_ref,      # ((T+1)*Bp, DIN_PAD) time-major, batch-padded, +ones col
                   w_ref,      # (SLAB_ROWS, 8H) consolidated weight slab
                   out_ref,    # (Bp, OUT_PAD)
                   xp_ref):    # VMEM scratch ((T+1)*Bp, 8H): hoisted input projection
    Bp = out_ref.shape[0]
    H = HIDDEN_DIM
    H2, H4, H6, H8 = 2 * H, 4 * H, 6 * H, 8 * H
    n_steps = x_ref.shape[0] // Bp            # T + 1 (one dummy epilogue step)

    # Hoisted input projection for all timesteps in one MXU pass.  The ones column
    # of x picks up the bias row of the slab, so layer-0 columns hold
    # x(t) @ Wih0^T + b0 and layer-1 columns hold b1 (their x-weight rows are zero).
    xp_ref[...] = jnp.dot(x_ref[...], w_ref[0:DIN_PAD, :],
                          preferred_element_type=jnp.float32)

    # Fused recurrent weight: h0 rows carry [Whh0^T | Wih1^T] per gate group,
    # h1 rows carry [0 | Whh1^T] -> one dot covers both layers' recurrences AND
    # layer-1's input projection.
    w_rec = w_ref[R_REC:R_REC + H2, :]                              # (2H, 8H)

    lane = jax.lax.broadcasted_iota(jnp.int32, (Bp, H2), 1)
    hcat = jnp.zeros((Bp, H2), jnp.float32)   # [h0(i-1) | h1(i-2)] (skewed by 1 step)
    ccat = jnp.zeros((Bp, H2), jnp.float32)   # [c0(i-1) | c1(i-2)]

    # Skewed (software-pipelined) recurrence, fully unrolled at trace time so the
    # LLO scheduler sees across iterations and h/c state stays in vregs.
    for i in range(n_steps):
        rec = jnp.dot(hcat, w_rec, preferred_element_type=jnp.float32)   # (Bp, 8H)
        g = rec + xp_ref[i * Bp:(i + 1) * Bp, :]
        # gate groups: [i0|i1] [f0|f1] [g0|g1] [o0|o1], each 2H wide
        c_new = (jax.nn.sigmoid(g[:, H2:H4]) * ccat
                 + jax.nn.sigmoid(g[:, 0:H2]) * jnp.tanh(g[:, H4:H6]))
        h_new = jax.nn.sigmoid(g[:, H6:H8]) * jnp.tanh(c_new)
        if i == 0:
            # Prologue: the layer-1 half was produced from bias-only garbage
            # (real layer-1 recurrence starts one iteration later) -> zero it.
            h_new = jnp.where(lane < H, h_new, 0.0)
            c_new = jnp.where(lane < H, c_new, 0.0)
        hcat, ccat = h_new, c_new
    # After iteration T: hcat[:, H:2H] == h1(T-1) == lstm_out[:, -1, :]
    # (hcat[:, :H] is a harmless finite dummy from the epilogue step).

    # MLP head.  fc1 weight has zero rows for the h0 half of hcat, so no state
    # slicing / lane shuffles are needed before the dot.
    fc1w = w_ref[R_FC1W:R_FC1W + H2, 0:FC_PAD]
    fc1b = w_ref[R_FC1B:R_FC1B + 1, 0:FC_PAD]
    fc2w = w_ref[R_FC2W:R_FC2W + FC_PAD, 0:OUT_PAD]
    fc2b = w_ref[R_FC2B:R_FC2B + 1, 0:OUT_PAD]
    hid = jnp.maximum(
        jnp.dot(hcat, fc1w, preferred_element_type=jnp.float32) + fc1b, 0.0)
    out_ref[...] = (jnp.dot(hid, fc2w, preferred_element_type=jnp.float32) + fc2b)


@jax.jit
def sohlstm_forward(x, w_slab):
    """x: (B, T, D_in) batch-first, like the PyTorch module."""
    B, T, Din = x.shape
    Bp = ((B + 7) // 8) * 8                       # fill f32 sublanes (free for B <= 8)

    # Time-major, batch-padded, +1 dummy epilogue step, +ones column (bias picker).
    xt = jnp.transpose(x.astype(jnp.float32), (1, 0, 2))          # (T, B, Din)
    x_aug = jnp.zeros((T + 1, Bp, DIN_PAD), jnp.float32)
    x_aug = x_aug.at[:T, :B, :Din].set(xt)
    x_aug = x_aug.at[:, :, Din].set(1.0)
    x_aug = x_aug.reshape((T + 1) * Bp, DIN_PAD)

    vmem = pl.BlockSpec(memory_space=pltpu.MemorySpace.VMEM)
    # Footprint is ~350 KB total: no grid / tiling needed on any generation.
    # For large serving batches, add a batch grid axis with
    # dimension_semantics=("parallel",) to shard across TensorCores.
    out = pl.pallas_call(
        sohlstm_kernel,
        out_shape=jax.ShapeDtypeStruct((Bp, OUT_PAD), jnp.float32),
        in_specs=[vmem, vmem],
        out_specs=vmem,
        scratch_shapes=[pltpu.VMEM(((T + 1) * Bp, 8 * HIDDEN_DIM), jnp.float32)],
    )(x_aug, w_slab)
    return out[:B, :OUT_DIM]


def init_params(key):
    """Raw PyTorch-layout weights (gate order i,f,g,o; bias_ih+bias_hh folded)."""
    H, Din = HIDDEN_DIM, INPUT_DIM
    k = 1.0 / np.sqrt(H)
    ks = jax.random.split(key, 12)
    u = lambda kk, shape: jax.random.uniform(kk, shape, jnp.float32, -k, k)
    return {
        "wih0": u(ks[0], (4 * H, Din)),
        "whh0": u(ks[1], (4 * H, H)),
        "b0": u(ks[2], (4 * H,)) + u(ks[3], (4 * H,)),
        "wih1": u(ks[4], (4 * H, H)),
        "whh1": u(ks[5], (4 * H, H)),
        "b1": u(ks[6], (4 * H,)) + u(ks[7], (4 * H,)),
        "fc1w": u(ks[8], (H // 2, H)),
        "fc1b": u(ks[9], (H // 2,)),
        "fc2w": u(ks[10], (OUT_DIM, H // 2)),
        "fc2b": u(ks[11], (OUT_DIM,)),
    }


def pack_params(raw):
    """Pack everything into ONE (SLAB_ROWS, 8H) f32 slab (2 DMA descriptors total)."""
    H, Din = HIDDEN_DIM, INPUT_DIM
    H2, H8 = 2 * H, 8 * H
    f32 = jnp.float32

    def gate_interleave(l0, l1, rows):
        """Place per-gate H-wide blocks into the [i0|i1|f0|f1|g0|g1|o0|o1] layout."""
        out = jnp.zeros((rows, H8), f32)
        for g in range(4):
            if l0 is not None:
                out = out.at[:, g * H2:g * H2 + H].set(l0[:, g * H:(g + 1) * H])
            if l1 is not None:
                out = out.at[:, g * H2 + H:(g + 1) * H2].set(l1[:, g * H:(g + 1) * H])
        return out

    slab = jnp.zeros((SLAB_ROWS, H8), f32)
    # rows 0:Din  — Wih0^T gate-interleaved (layer-1 half zero)
    slab = slab.at[0:Din, :].set(gate_interleave(raw["wih0"].T.astype(f32), None, Din))
    # row Din     — fused bias row (b0 | b1), picked up by the ones column of x_aug
    slab = slab.at[Din:Din + 1, :].set(
        gate_interleave(raw["b0"].reshape(1, -1).astype(f32),
                        raw["b1"].reshape(1, -1).astype(f32), 1))
    # rows R_REC: — fused recurrent weight
    slab = slab.at[R_REC:R_REC + H, :].set(
        gate_interleave(raw["whh0"].T.astype(f32), raw["wih1"].T.astype(f32), H))
    slab = slab.at[R_REC + H:R_REC + H2, :].set(
        gate_interleave(None, raw["whh1"].T.astype(f32), H))
    # FC head (width FC_PAD/OUT_PAD = 128; lanes 128:256 stay zero)
    slab = slab.at[R_FC1W + H:R_FC1W + H2, :H // 2].set(raw["fc1w"].T.astype(f32))
    slab = slab.at[R_FC1B, :H // 2].set(raw["fc1b"].astype(f32))
    slab = slab.at[R_FC2W:R_FC2W + H // 2, :OUT_DIM].set(raw["fc2w"].T.astype(f32))
    slab = slab.at[R_FC2B, :OUT_DIM].set(raw["fc2b"].astype(f32))
    return slab


def reference_forward(x, raw):
    """Pure-JAX reference with PyTorch-identical semantics (for validation)."""
    B, T, _ = x.shape
    H = HIDDEN_DIM

    def cell(x_t, h, c, wih, whh, b):
        g_all = x_t @ wih.T + h @ whh.T + b
        i = jax.nn.sigmoid(g_all[:, :H])
        f = jax.nn.sigmoid(g_all[:, H:2 * H])
        g = jnp.tanh(g_all[:, 2 * H:3 * H])
        o = jax.nn.sigmoid(g_all[:, 3 * H:])
        c = f * c + i * g
        return o * jnp.tanh(c), c

    h0 = c0 = h1 = c1 = jnp.zeros((B, H), jnp.float32)
    for t in range(T):
        h0, c0 = cell(x[:, t], h0, c0, raw["wih0"], raw["whh0"], raw["b0"])
        h1, c1 = cell(h0, h1, c1, raw["wih1"], raw["whh1"], raw["b1"])
    hid = jnp.maximum(h1 @ raw["fc1w"].T + raw["fc1b"], 0.0)
    return hid @ raw["fc2w"].T + raw["fc2b"]


if __name__ == "__main__":
    key = jax.random.PRNGKey(0)
    kx, kp = jax.random.split(key)
    x = jax.random.normal(kx, (BATCH, SEQ, INPUT_DIM), jnp.float32)
    raw = init_params(kp)
    w_slab = pack_params(raw)

    out = jax.block_until_ready(sohlstm_forward(x, w_slab))
    ref = jax.block_until_ready(reference_forward(x, raw))

    assert out.shape == (BATCH, OUT_DIM)
    np.testing.assert_allclose(np.asarray(out), np.asarray(ref),
                               rtol=1e-4, atol=1e-4)
    print("KERNEL_OK")
</pallas_src>

<mosaic_0001>
module attributes {stable_mosaic.version = 11 : i64} {
  func.func @sohlstm_kernel(%arg0: memref<72x8xf32, #tpu.memory_space<vmem>>, %arg1: memref<280x256xf32, #tpu.memory_space<vmem>>, %arg2: memref<8x128xf32, #tpu.memory_space<vmem>>, %arg3: memref<72x256xf32, #tpu.memory_space<vmem>>) attributes {dimension_semantics = [], scalar_prefetch = 0 : i64, scratch_operands = 1 : i64, tpu.core_type = #tpu.core_type<tc>} {
    %c0 = arith.constant 0 : index
    %c0_0 = arith.constant 0 : index
    %0 = vector.load %arg0[%c0, %c0_0] : memref<72x8xf32, #tpu.memory_space<vmem>>, vector<72x8xf32>
    %c0_1 = arith.constant 0 : index
    %c0_2 = arith.constant 0 : index
    %1 = vector.load %arg1[%c0_1, %c0_2] : memref<280x256xf32, #tpu.memory_space<vmem>>, vector<8x256xf32>
    %cst = arith.constant dense<0.000000e+00> : vector<72x256xf32>
    %2 = tpu.matmul %0, %1, %cst {dimension_numbers = #tpu.dot_dimension_numbers<[1], [0], [0], [1], [0, 0, 1, 1], [], []>} : vector<72x8xf32>, vector<8x256xf32>, vector<72x256xf32> -> vector<72x256xf32>
    %c0_3 = arith.constant 0 : index
    %c0_4 = arith.constant 0 : index
    %3 = vector.load %arg3[%c0_3, %c0_4] : memref<72x256xf32, #tpu.memory_space<vmem>>, vector<72x256xf32>
    tpu.vector_store %arg3[%c0_3, %c0_4], %2 {strides = array<i32>} : memref<72x256xf32, #tpu.memory_space<vmem>>, vector<72x256xf32>,
    %c8 = arith.constant 8 : index
    %c0_5 = arith.constant 0 : index
    %4 = vector.load %arg1[%c8, %c0_5] : memref<280x256xf32, #tpu.memory_space<vmem>>, vector<64x256xf32>
    %5 = tpu.iota {dimensions = array<i32: 1>} : vector<8x64xi32>
    %cst_6 = arith.constant 0.000000e+00 : f32
    %6 = vector.broadcast %cst_6 : f32 to vector<8x64xf32>
    %cst_7 = arith.constant 0.000000e+00 : f32
    %7 = vector.broadcast %cst_7 : f32 to vector<8x64xf32>
    %cst_8 = arith.constant dense<0.000000e+00> : vector<8x256xf32>
    %8 = tpu.matmul %6, %4, %cst_8 {dimension_numbers = #tpu.dot_dimension_numbers<[1], [0], [0], [1], [0, 0, 1, 1], [], []>} : vector<8x64xf32>, vector<64x256xf32>, vector<8x256xf32> -> vector<8x256xf32>
    %c0_9 = arith.constant 0 : index
    %c0_10 = arith.constant 0 : index
    %9 = vector.load %arg3[%c0_9, %c0_10] : memref<72x256xf32, #tpu.memory_space<vmem>>, vector<8x256xf32>
    %10 = arith.addf %8, %9 : vector<8x256xf32>
    %11 = vector.extract_strided_slice %10 {offsets = [0, 64], sizes = [8, 64], strides = [1, 1]} : vector<8x256xf32> to vector<8x64xf32>
    %12 = arith.negf %11 : vector<8x64xf32>
    %13 = math.exp %12 : vector<8x64xf32>
    %cst_11 = arith.constant 1.000000e+00 : f32
    %14 = vector.broadcast %cst_11 : f32 to vector<8x64xf32>
    %15 = arith.addf %14, %13 : vector<8x64xf32>
    %16 = arith.divf %14, %15 : vector<8x64xf32>
    %17 = arith.mulf %16, %7 : vector<8x64xf32>
    %18 = vector.extract_strided_slice %10 {offsets = [0, 0], sizes = [8, 64], strides = [1, 1]} : vector<8x256xf32> to vector<8x64xf32>
    %19 = arith.negf %18 : vector<8x64xf32>
    %20 = math.exp %19 : vector<8x64xf32>
    %cst_12 = arith.constant 1.000000e+00 : f32
    %21 = vector.broadcast %cst_12 : f32 to vector<8x64xf32>
    %22 = arith.addf %21, %20 : vector<8x64xf32>
    %23 = arith.divf %21, %22 : vector<8x64xf32>
    %24 = vector.extract_strided_slice %10 {offsets = [0, 128], sizes = [8, 64], strides = [1, 1]} : vector<8x256xf32> to vector<8x64xf32>
    %25 = math.tanh %24 : vector<8x64xf32>
    %26 = arith.mulf %23, %25 : vector<8x64xf32>
    %27 = arith.addf %17, %26 : vector<8x64xf32>
    %28 = vector.extract_strided_slice %10 {offsets = [0, 192], sizes = [8, 64], strides = [1, 1]} : vector<8x256xf32> to vector<8x64xf32>
    %29 = arith.negf %28 : vector<8x64xf32>
    %30 = math.exp %29 : vector<8x64xf32>
    %cst_13 = arith.constant 1.000000e+00 : f32
    %31 = vector.broadcast %cst_13 : f32 to vector<8x64xf32>
    %32 = arith.addf %31, %30 : vector<8x64xf32>
    %33 = arith.divf %31, %32 : vector<8x64xf32>
    %34 = math.tanh %27 : vector<8x64xf32>
    %35 = arith.mulf %33, %34 : vector<8x64xf32>
    %c32_i32 = arith.constant 32 : i32
    %36 = vector.broadcast %c32_i32 : i32 to vector<8x64xi32>
    %37 = arith.cmpi slt, %5, %36 : vector<8x64xi32>
    %cst_14 = arith.constant 0.000000e+00 : f32
    %38 = vector.broadcast %cst_14 : f32 to vector<8x64xf32>
    %39 = arith.select %37, %35, %38 : vector<8x64xi1>, vector<8x64xf32>
    %c32_i32_15 = arith.constant 32 : i32
    %40 = vector.broadcast %c32_i32_15 : i32 to vector<8x64xi32>
    %41 = arith.cmpi slt, %5, %40 : vector<8x64xi32>
    %cst_16 = arith.constant 0.000000e+00 : f32
    %42 = vector.broadcast %cst_16 : f32 to vector<8x64xf32>
    %43 = arith.select %41, %27, %42 : vector<8x64xi1>, vector<8x64xf32>
    %cst_17 = arith.constant dense<0.000000e+00> : vector<8x256xf32>
    %44 = tpu.matmul %39, %4, %cst_17 {dimension_numbers = #tpu.dot_dimension_numbers<[1], [0], [0], [1], [0, 0, 1, 1], [], []>} : vector<8x64xf32>, vector<64x256xf32>, vector<8x256xf32> -> vector<8x256xf32>
    %c8_18 = arith.constant 8 : index
    %c0_19 = arith.constant 0 : index
    %45 = vector.load %arg3[%c8_18, %c0_19] : memref<72x256xf32, #tpu.memory_space<vmem>>, vector<8x256xf32>
    %46 = arith.addf %44, %45 : vector<8x256xf32>
    %47 = vector.extract_strided_slice %46 {offsets = [0, 64], sizes = [8, 64], strides = [1, 1]} : vector<8x256xf32> to vector<8x64xf32>
    %48 = arith.negf %47 : vector<8x64xf32>
    %49 = math.exp %48 : vector<8x64xf32>
    %cst_20 = arith.constant 1.000000e+00 : f32
    %50 = vector.broadcast %cst_20 : f32 to vector<8x64xf32>
    %51 = arith.addf %50, %49 : vector<8x64xf32>
    %52 = arith.divf %50, %51 : vector<8x64xf32>
    %53 = arith.mulf %52, %43 : vector<8x64xf32>
    %54 = vector.extract_strided_slice %46 {offsets = [0, 0], sizes = [8, 64], strides = [1, 1]} : vector<8x256xf32> to vector<8x64xf32>
    %55 = arith.negf %54 : vector<8x64xf32>
    %56 = math.exp %55 : vector<8x64xf32>
    %cst_21 = arith.constant 1.000000e+00 : f32
    %57 = vector.broadcast %cst_21 : f32 to vector<8x64xf32>
    %58 = arith.addf %57, %56 : vector<8x64xf32>
    %59 = arith.divf %57, %58 : vector<8x64xf32>
    %60 = vector.extract_strided_slice %46 {offsets = [0, 128], sizes = [8, 64], strides = [1, 1]} : vector<8x256xf32> to vector<8x64xf32>
    %61 = math.tanh %60 : vector<8x64xf32>
    %62 = arith.mulf %59, %61 : vector<8x64xf32>
    %63 = arith.addf %53, %62 : vector<8x64xf32>
    %64 = vector.extract_strided_slice %46 {offsets = [0, 192], sizes = [8, 64], strides = [1, 1]} : vector<8x256xf32> to vector<8x64xf32>
    %65 = arith.negf %64 : vector<8x64xf32>
    %66 = math.exp %65 : vector<8x64xf32>
    %cst_22 = arith.constant 1.000000e+00 : f32
    %67 = vector.broadcast %cst_22 : f32 to vector<8x64xf32>
    %68 = arith.addf %67, %66 : vector<8x64xf32>
    %69 = arith.divf %67, %68 : vector<8x64xf32>
    %70 = math.tanh %63 : vector<8x64xf32>
    %71 = arith.mulf %69, %70 : vector<8x64xf32>
    %cst_23 = arith.constant dense<0.000000e+00> : vector<8x256xf32>
    %72 = tpu.matmul %71, %4, %cst_23 {dimension_numbers = #tpu.dot_dimension_numbers<[1], [0], [0], [1], [0, 0, 1, 1], [], []>} : vector<8x64xf32>, vector<64x256xf32>, vector<8x256xf32> -> vector<8x256xf32>
    %c16 = arith.constant 16 : index
    %c0_24 = arith.constant 0 : index
    %73 = vector.load %arg3[%c16, %c0_24] : memref<72x256xf32, #tpu.memory_space<vmem>>, vector<8x256xf32>
    %74 = arith.addf %72, %73 : vector<8x256xf32>
    %75 = vector.extract_strided_slice %74 {offsets = [0, 64], sizes = [8, 64], strides = [1, 1]} : vector<8x256xf32> to vector<8x64xf32>
    %76 = arith.negf %75 : vector<8x64xf32>
    %77 = math.exp %76 : vector<8x64xf32>
    %cst_25 = arith.constant 1.000000e+00 : f32
    %78 = vector.broadcast %cst_25 : f32 to vector<8x64xf32>
    %79 = arith.addf %78, %77 : vector<8x64xf32>
    %80 = arith.divf %78, %79 : vector<8x64xf32>
    %81 = arith.mulf %80, %63 : vector<8x64xf32>
    %82 = vector.extract_strided_slice %74 {offsets = [0, 0], sizes = [8, 64], strides = [1, 1]} : vector<8x256xf32> to vector<8x64xf32>
    %83 = arith.negf %82 : vector<8x64xf32>
    %84 = math.exp %83 : vector<8x64xf32>
    %cst_26 = arith.constant 1.000000e+00 : f32
    %85 = vector.broadcast %cst_26 : f32 to vector<8x64xf32>
    %86 = arith.addf %85, %84 : vector<8x64xf32>
    %87 = arith.divf %85, %86 : vector<8x64xf32>
    %88 = vector.extract_strided_slice %74 {offsets = [0, 128], sizes = [8, 64], strides = [1, 1]} : vector<8x256xf32> to vector<8x64xf32>
    %89 = math.tanh %88 : vector<8x64xf32>
    %90 = arith.mulf %87, %89 : vector<8x64xf32>
    %91 = arith.addf %81, %90 : vector<8x64xf32>
    %92 = vector.extract_strided_slice %74 {offsets = [0, 192], sizes = [8, 64], strides = [1, 1]} : vector<8x256xf32> to vector<8x64xf32>
    %93 = arith.negf %92 : vector<8x64xf32>
    %94 = math.exp %93 : vector<8x64xf32>
    %cst_27 = arith.constant 1.000000e+00 : f32
    %95 = vector.broadcast %cst_27 : f32 to vector<8x64xf32>
    %96 = arith.addf %95, %94 : vector<8x64xf32>
    %97 = arith.divf %95, %96 : vector<8x64xf32>
    %98 = math.tanh %91 : vector<8x64xf32>
    %99 = arith.mulf %97, %98 : vector<8x64xf32>
    %cst_28 = arith.constant dense<0.000000e+00> : vector<8x256xf32>
    %100 = tpu.matmul %99, %4, %cst_28 {dimension_numbers = #tpu.dot_dimension_numbers<[1], [0], [0], [1], [0, 0, 1, 1], [], []>} : vector<8x64xf32>, vector<64x256xf32>, vector<8x256xf32> -> vector<8x256xf32>
    %c24 = arith.constant 24 : index
    %c0_29 = arith.constant 0 : index
    %101 = vector.load %arg3[%c24, %c0_29] : memref<72x256xf32, #tpu.memory_space<vmem>>, vector<8x256xf32>
    %102 = arith.addf %100, %101 : vector<8x256xf32>
    %103 = vector.extract_strided_slice %102 {offsets = [0, 64], sizes = [8, 64], strides = [1, 1]} : vector<8x256xf32> to vector<8x64xf32>
    %104 = arith.negf %103 : vector<8x64xf32>
    %105 = math.exp %104 : vector<8x64xf32>
    %cst_30 = arith.constant 1.000000e+00 : f32
    %106 = vector.broadcast %cst_30 : f32 to vector<8x64xf32>
    %107 = arith.addf %106, %105 : vector<8x64xf32>
    %108 = arith.divf %106, %107 : vector<8x64xf32>
    %109 = arith.mulf %108, %91 : vector<8x64xf32>
    %110 = vector.extract_strided_slice %102 {offsets = [0, 0], sizes = [8, 64], strides = [1, 1]} : vector<8x256xf32> to vector<8x64xf32>
    %111 = arith.negf %110 : vector<8x64xf32>
    %112 = math.exp %111 : vector<8x64xf32>
    %cst_31 = arith.constant 1.000000e+00 : f32
    %113 = vector.broadcast %cst_31 : f32 to vector<8x64xf32>
    %114 = arith.addf %113, %112 : vector<8x64xf32>
    %115 = arith.divf %113, %114 : vector<8x64xf32>
    %116 = vector.extract_strided_slice %102 {offsets = [0, 128], sizes = [8, 64], strides = [1, 1]} : vector<8x256xf32> to vector<8x64xf32>
    %117 = math.tanh %116 : vector<8x64xf32>
    %118 = arith.mulf %115, %117 : vector<8x64xf32>
    %119 = arith.addf %109, %118 : vector<8x64xf32>
    %120 = vector.extract_strided_slice %102 {offsets = [0, 192], sizes = [8, 64], strides = [1, 1]} : vector<8x256xf32> to vector<8x64xf32>
    %121 = arith.negf %120 : vector<8x64xf32>
    %122 = math.exp %121 : vector<8x64xf32>
    %cst_32 = arith.constant 1.000000e+00 : f32
    %123 = vector.broadcast %cst_32 : f32 to vector<8x64xf32>
    %124 = arith.addf %123, %122 : vector<8x64xf32>
    %125 = arith.divf %123, %124 : vector<8x64xf32>
    %126 = math.tanh %119 : vector<8x64xf32>
    %127 = arith.mulf %125, %126 : vector<8x64xf32>
    %cst_33 = arith.constant dense<0.000000e+00> : vector<8x256xf32>
    %128 = tpu.matmul %127, %4, %cst_33 {dimension_numbers = #tpu.dot_dimension_numbers<[1], [0], [0], [1], [0, 0, 1, 1], [], []>} : vector<8x64xf32>, vector<64x256xf32>, vector<8x256xf32> -> vector<8x256xf32>
    %c32 = arith.constant 32 : index
    %c0_34 = arith.constant 0 : index
    %129 = vector.load %arg3[%c32, %c0_34] : memref<72x256xf32, #tpu.memory_space<vmem>>, vector<8x256xf32>
    %130 = arith.addf %128, %129 : vector<8x256xf32>
    %131 = vector.extract_strided_slice %130 {offsets = [0, 64], sizes = [8, 64], strides = [1, 1]} : vector<8x256xf32> to vector<8x64xf32>
    %132 = arith.negf %131 : vector<8x64xf32>
    %133 = math.exp %132 : vector<8x64xf32>
    %cst_35 = arith.constant 1.000000e+00 : f32
    %134 = vector.broadcast %cst_35 : f32 to vector<8x64xf32>
    %135 = arith.addf %134, %133 : vector<8x64xf32>
    %136 = arith.divf %134, %135 : vector<8x64xf32>
    %137 = arith.mulf %136, %119 : vector<8x64xf32>
    %138 = vector.extract_strided_slice %130 {offsets = [0, 0], sizes = [8, 64], strides = [1, 1]} : vector<8x256xf32> to vector<8x64xf32>
    %139 = arith.negf %138 : vector<8x64xf32>
    %140 = math.exp %139 : vector<8x64xf32>
    %cst_36 = arith.constant 1.000000e+00 : f32
    %141 = vector.broadcast %cst_36 : f32 to vector<8x64xf32>
    %142 = arith.addf %141, %140 : vector<8x64xf32>
    %143 = arith.divf %141, %142 : vector<8x64xf32>
    %144 = vector.extract_strided_slice %130 {offsets = [0, 128], sizes = [8, 64], strides = [1, 1]} : vector<8x256xf32> to vector<8x64xf32>
    %145 = math.tanh %144 : vector<8x64xf32>
    %146 = arith.mulf %143, %145 : vector<8x64xf32>
    %147 = arith.addf %137, %146 : vector<8x64xf32>
    %148 = vector.extract_strided_slice %130 {offsets = [0, 192], sizes = [8, 64], strides = [1, 1]} : vector<8x256xf32> to vector<8x64xf32>
    %149 = arith.negf %148 : vector<8x64xf32>
    %150 = math.exp %149 : vector<8x64xf32>
    %cst_37 = arith.constant 1.000000e+00 : f32
    %151 = vector.broadcast %cst_37 : f32 to vector<8x64xf32>
    %152 = arith.addf %151, %150 : vector<8x64xf32>
    %153 = arith.divf %151, %152 : vector<8x64xf32>
    %154 = math.tanh %147 : vector<8x64xf32>
    %155 = arith.mulf %153, %154 : vector<8x64xf32>
    %cst_38 = arith.constant dense<0.000000e+00> : vector<8x256xf32>
    %156 = tpu.matmul %155, %4, %cst_38 {dimension_numbers = #tpu.dot_dimension_numbers<[1], [0], [0], [1], [0, 0, 1, 1], [], []>} : vector<8x64xf32>, vector<64x256xf32>, vector<8x256xf32> -> vector<8x256xf32>
    %c40 = arith.constant 40 : index
    %c0_39 = arith.constant 0 : index
    %157 = vector.load %arg3[%c40, %c0_39] : memref<72x256xf32, #tpu.memory_space<vmem>>, vector<8x256xf32>
    %158 = arith.addf %156, %157 : vector<8x256xf32>
    %159 = vector.extract_strided_slice %158 {offsets = [0, 64], sizes = [8, 64], strides = [1, 1]} : vector<8x256xf32> to vector<8x64xf32>
    %160 = arith.negf %159 : vector<8x64xf32>
    %161 = math.exp %160 : vector<8x64xf32>
    %cst_40 = arith.constant 1.000000e+00 : f32
    %162 = vector.broadcast %cst_40 : f32 to vector<8x64xf32>
    %163 = arith.addf %162, %161 : vector<8x64xf32>
    %164 = arith.divf %162, %163 : vector<8x64xf32>
    %165 = arith.mulf %164, %147 : vector<8x64xf32>
    %166 = vector.extract_strided_slice %158 {offsets = [0, 0], sizes = [8, 64], strides = [1, 1]} : vector<8x256xf32> to vector<8x64xf32>
    %167 = arith.negf %166 : vector<8x64xf32>
    %168 = math.exp %167 : vector<8x64xf32>
    %cst_41 = arith.constant 1.000000e+00 : f32
    %169 = vector.broadcast %cst_41 : f32 to vector<8x64xf32>
    %170 = arith.addf %169, %168 : vector<8x64xf32>
    %171 = arith.divf %169, %170 : vector<8x64xf32>
    %172 = vector.extract_strided_slice %158 {offsets = [0, 128], sizes = [8, 64], strides = [1, 1]} : vector<8x256xf32> to vector<8x64xf32>
    %173 = math.tanh %172 : vector<8x64xf32>
    %174 = arith.mulf %171, %173 : vector<8x64xf32>
    %175 = arith.addf %165, %174 : vector<8x64xf32>
    %176 = vector.extract_strided_slice %158 {offsets = [0, 192], sizes = [8, 64], strides = [1, 1]} : vector<8x256xf32> to vector<8x64xf32>
    %177 = arith.negf %176 : vector<8x64xf32>
    %178 = math.exp %177 : vector<8x64xf32>
    %cst_42 = arith.constant 1.000000e+00 : f32
    %179 = vector.broadcast %cst_42 : f32 to vector<8x64xf32>
    %180 = arith.addf %179, %178 : vector<8x64xf32>
    %181 = arith.divf %179, %180 : vector<8x64xf32>
    %182 = math.tanh %175 : vector<8x64xf32>
    %183 = arith.mulf %181, %182 : vector<8x64xf32>
    %cst_43 = arith.constant dense<0.000000e+00> : vector<8x256xf32>
    %184 = tpu.matmul %183, %4, %cst_43 {dimension_numbers = #tpu.dot_dimension_numbers<[1], [0], [0], [1], [0, 0, 1, 1], [], []>} : vector<8x64xf32>, vector<64x256xf32>, vector<8x256xf32> -> vector<8x256xf32>
    %c48 = arith.constant 48 : index
    %c0_44 = arith.constant 0 : index
    %185 = vector.load %arg3[%c48, %c0_44] : memref<72x256xf32, #tpu.memory_space<vmem>>, vector<8x256xf32>
    %186 = arith.addf %184, %185 : vector<8x256xf32>
    %187 = vector.extract_strided_slice %186 {offsets = [0, 64], sizes = [8, 64], strides = [1, 1]} : vector<8x256xf32> to vector<8x64xf32>
    %188 = arith.negf %187 : vector<8x64xf32>
    %189 = math.exp %188 : vector<8x64xf32>
    %cst_45 = arith.constant 1.000000e+00 : f32
    %190 = vector.broadcast %cst_45 : f32 to vector<8x64xf32>
    %191 = arith.addf %190, %189 : vector<8x64xf32>
    %192 = arith.divf %190, %191 : vector<8x64xf32>
    %193 = arith.mulf %192, %175 : vector<8x64xf32>
    %194 = vector.extract_strided_slice %186 {offsets = [0, 0], sizes = [8, 64], strides = [1, 1]} : vector<8x256xf32> to vector<8x64xf32>
    %195 = arith.negf %194 : vector<8x64xf32>
    %196 = math.exp %195 : vector<8x64xf32>
    %cst_46 = arith.constant 1.000000e+00 : f32
    %197 = vector.broadcast %cst_46 : f32 to vector<8x64xf32>
    %198 = arith.addf %197, %196 : vector<8x64xf32>
    %199 = arith.divf %197, %198 : vector<8x64xf32>
    %200 = vector.extract_strided_slice %186 {offsets = [0, 128], sizes = [8, 64], strides = [1, 1]} : vector<8x256xf32> to vector<8x64xf32>
    %201 = math.tanh %200 : vector<8x64xf32>
    %202 = arith.mulf %199, %201 : vector<8x64xf32>
    %203 = arith.addf %193, %202 : vector<8x64xf32>
    %204 = vector.extract_strided_slice %186 {offsets = [0, 192], sizes = [8, 64], strides = [1, 1]} : vector<8x256xf32> to vector<8x64xf32>
    %205 = arith.negf %204 : vector<8x64xf32>
    %206 = math.exp %205 : vector<8x64xf32>
    %cst_47 = arith.constant 1.000000e+00 : f32
    %207 = vector.broadcast %cst_47 : f32 to vector<8x64xf32>
    %208 = arith.addf %207, %206 : vector<8x64xf32>
    %209 = arith.divf %207, %208 : vector<8x64xf32>
    %210 = math.tanh %203 : vector<8x64xf32>
    %211 = arith.mulf %209, %210 : vector<8x64xf32>
    %cst_48 = arith.constant dense<0.000000e+00> : vector<8x256xf32>
    %212 = tpu.matmul %211, %4, %cst_48 {dimension_numbers = #tpu.dot_dimension_numbers<[1], [0], [0], [1], [0, 0, 1, 1], [], []>} : vector<8x64xf32>, vector<64x256xf32>, vector<8x256xf32> -> vector<8x256xf32>
    %c56 = arith.constant 56 : index
    %c0_49 = arith.constant 0 : index
    %213 = vector.load %arg3[%c56, %c0_49] : memref<72x256xf32, #tpu.memory_space<vmem>>, vector<8x256xf32>
    %214 = arith.addf %212, %213 : vector<8x256xf32>
    %215 = vector.extract_strided_slice %214 {offsets = [0, 64], sizes = [8, 64], strides = [1, 1]} : vector<8x256xf32> to vector<8x64xf32>
    %216 = arith.negf %215 : vector<8x64xf32>
    %217 = math.exp %216 : vector<8x64xf32>
    %cst_50 = arith.constant 1.000000e+00 : f32
    %218 = vector.broadcast %cst_50 : f32 to vector<8x64xf32>
    %219 = arith.addf %218, %217 : vector<8x64xf32>
    %220 = arith.divf %218, %219 : vector<8x64xf32>
    %221 = arith.mulf %220, %203 : vector<8x64xf32>
    %222 = vector.extract_strided_slice %214 {offsets = [0, 0], sizes = [8, 64], strides = [1, 1]} : vector<8x256xf32> to vector<8x64xf32>
    %223 = arith.negf %222 : vector<8x64xf32>
    %224 = math.exp %223 : vector<8x64xf32>
    %cst_51 = arith.constant 1.000000e+00 : f32
    %225 = vector.broadcast %cst_51 : f32 to vector<8x64xf32>
    %226 = arith.addf %225, %224 : vector<8x64xf32>
    %227 = arith.divf %225, %226 : vector<8x64xf32>
    %228 = vector.extract_strided_slice %214 {offsets = [0, 128], sizes = [8, 64], strides = [1, 1]} : vector<8x256xf32> to vector<8x64xf32>
    %229 = math.tanh %228 : vector<8x64xf32>
    %230 = arith.mulf %227, %229 : vector<8x64xf32>
    %231 = arith.addf %221, %230 : vector<8x64xf32>
    %232 = vector.extract_strided_slice %214 {offsets = [0, 192], sizes = [8, 64], strides = [1, 1]} : vector<8x256xf32> to vector<8x64xf32>
    %233 = arith.negf %232 : vector<8x64xf32>
    %234 = math.exp %233 : vector<8x64xf32>
    %cst_52 = arith.constant 1.000000e+00 : f32
    %235 = vector.broadcast %cst_52 : f32 to vector<8x64xf32>
    %236 = arith.addf %235, %234 : vector<8x64xf32>
    %237 = arith.divf %235, %236 : vector<8x64xf32>
    %238 = math.tanh %231 : vector<8x64xf32>
    %239 = arith.mulf %237, %238 : vector<8x64xf32>
    %cst_53 = arith.constant dense<0.000000e+00> : vector<8x256xf32>
    %240 = tpu.matmul %239, %4, %cst_53 {dimension_numbers = #tpu.dot_dimension_numbers<[1], [0], [0], [1], [0, 0, 1, 1], [], []>} : vector<8x64xf32>, vector<64x256xf32>, vector<8x256xf32> -> vector<8x256xf32>
    %c64 = arith.constant 64 : index
    %c0_54 = arith.constant 0 : index
    %241 = vector.load %arg3[%c64, %c0_54] : memref<72x256xf32, #tpu.memory_space<vmem>>, vector<8x256xf32>
    %242 = arith.addf %240, %241 : vector<8x256xf32>
    %243 = vector.extract_strided_slice %242 {offsets = [0, 64], sizes = [8, 64], strides = [1, 1]} : vector<8x256xf32> to vector<8x64xf32>
    %244 = arith.negf %243 : vector<8x64xf32>
    %245 = math.exp %244 : vector<8x64xf32>
    %cst_55 = arith.constant 1.000000e+00 : f32
    %246 = vector.broadcast %cst_55 : f32 to vector<8x64xf32>
    %247 = arith.addf %246, %245 : vector<8x64xf32>
    %248 = arith.divf %246, %247 : vector<8x64xf32>
    %249 = arith.mulf %248, %231 : vector<8x64xf32>
    %250 = vector.extract_strided_slice %242 {offsets = [0, 0], sizes = [8, 64], strides = [1, 1]} : vector<8x256xf32> to vector<8x64xf32>
    %251 = arith.negf %250 : vector<8x64xf32>
    %252 = math.exp %251 : vector<8x64xf32>
    %cst_56 = arith.constant 1.000000e+00 : f32
    %253 = vector.broadcast %cst_56 : f32 to vector<8x64xf32>
    %254 = arith.addf %253, %252 : vector<8x64xf32>
    %255 = arith.divf %253, %254 : vector<8x64xf32>
    %256 = vector.extract_strided_slice %242 {offsets = [0, 128], sizes = [8, 64], strides = [1, 1]} : vector<8x256xf32> to vector<8x64xf32>
    %257 = math.tanh %256 : vector<8x64xf32>
    %258 = arith.mulf %255, %257 : vector<8x64xf32>
    %259 = arith.addf %249, %258 : vector<8x64xf32>
    %260 = vector.extract_strided_slice %242 {offsets = [0, 192], sizes = [8, 64], strides = [1, 1]} : vector<8x256xf32> to vector<8x64xf32>
    %261 = arith.negf %260 : vector<8x64xf32>
    %262 = math.exp %261 : vector<8x64xf32>
    %cst_57 = arith.constant 1.000000e+00 : f32
    %263 = vector.broadcast %cst_57 : f32 to vector<8x64xf32>
    %264 = arith.addf %263, %262 : vector<8x64xf32>
    %265 = arith.divf %263, %264 : vector<8x64xf32>
    %266 = math.tanh %259 : vector<8x64xf32>
    %267 = arith.mulf %265, %266 : vector<8x64xf32>
    %c72 = arith.constant 72 : index
    %c0_58 = arith.constant 0 : index
    %268 = vector.load %arg1[%c72, %c0_58] : memref<280x256xf32, #tpu.memory_space<vmem>>, vector<64x128xf32>
    %c136 = arith.constant 136 : index
    %c0_59 = arith.constant 0 : index
    %269 = vector.load %arg1[%c136, %c0_59] : memref<280x256xf32, #tpu.memory_space<vmem>>, vector<1x128xf32>
    %c144 = arith.constant 144 : index
    %c0_60 = arith.constant 0 : index
    %270 = vector.load %arg1[%c144, %c0_60] : memref<280x256xf32, #tpu.memory_space<vmem>>, vector<128x128xf32>
    %c272 = arith.constant 272 : index
    %c0_61 = arith.constant 0 : index
    %271 = vector.load %arg1[%c272, %c0_61] : memref<280x256xf32, #tpu.memory_space<vmem>>, vector<1x128xf32>
    %cst_62 = arith.constant dense<0.000000e+00> : vector<8x128xf32>
    %272 = tpu.matmul %267, %268, %cst_62 {dimension_numbers = #tpu.dot_dimension_numbers<[1], [0], [0], [1], [0, 0, 1, 1], [], []>} : vector<8x64xf32>, vector<64x128xf32>, vector<8x128xf32> -> vector<8x128xf32>
    %273 = vector.broadcast %269 : vector<1x128xf32> to vector<8x128xf32>
    %274 = arith.addf %272, %273 : vector<8x128xf32>
    %cst_63 = arith.constant 0.000000e+00 : f32
    %275 = vector.broadcast %cst_63 : f32 to vector<8x128xf32>
    %276 = arith.maximumf %274, %275 : vector<8x128xf32>
    %cst_64 = arith.constant dense<0.000000e+00> : vector<8x128xf32>
    %277 = tpu.matmul %276, %270, %cst_64 {dimension_numbers = #tpu.dot_dimension_numbers<[1], [0], [0], [1], [0, 0, 1, 1], [], []>} : vector<8x128xf32>, vector<128x128xf32>, vector<8x128xf32> -> vector<8x128xf32>
    %278 = vector.broadcast %271 : vector<1x128xf32> to vector<8x128xf32>
    %279 = arith.addf %277, %278 : vector<8x128xf32>
    %c0_65 = arith.constant 0 : index
    %c0_66 = arith.constant 0 : index
    %280 = vector.load %arg2[%c0_65, %c0_66] : memref<8x128xf32, #tpu.memory_space<vmem>>, vector<8x128xf32>
    tpu.vector_store %arg2[%c0_65, %c0_66], %279 {strides = array<i32>} : memref<8x128xf32, #tpu.memory_space<vmem>>, vector<8x128xf32>,
    return
  }
}

</mosaic_0001>

<bundles_post_ra>
// kernel: sohlstm_forward.1
= control target key start
LH: loop header
LB: loop body
LE: loop exit
PB: predicated region body
PF: predicated region fallthrough
CT: control target
= control target key end

     0   :  { %7 = vsyncpa [#allocation4], 0  ;;  %s1328_s12 = smov [#allocation3]   ;;  %s1329_s14 = smov 256   ;;  %s1682_s0 = inlined_call_operand.vmem [shape: f32[72,8], index: 0, kind: input, shape index: {}]   ;;  %s1683_s1 = inlined_call_operand.hbm [shape: f32[280,256], index: 1, kind: input, shape index: {}]   ;;  %s1684_s2 = inlined_call_operand.vmem [shape: f32[8,128], index: 2, kind: output, shape index: {}]  }
   0x1   :  { %s14_s11 = sshll.u32 %s1683_s1, 4  ;;  %s16_s13 = sshll.u32 %s1328_s12, 4  ;;  %s15_s11 = int_to_ptr.hbm [resolvable:$true] %s14_s11  ;;  %s17_s13 = int_to_ptr.vmem [resolvable:$true] %s16_s13 }
   0x2   :  { %s1330_s15 = smov 16  }
   0x3   :  { %22 = dma.hbm_to_vmem [thread:$0]  %s15_s11, 8960, %s17_s13, [#allocation4], %s1329_s14, %s1329_s14, %s1330_s15  }
   0x4   :  { %1326 = dma.done.wait [#allocation4], 8960  }
   0x5   :  { %1327 = vsyncadd [#allocation4], 4294958336  ;;  %vm38_vm0 = vcmask 64512   ;;  %v36_v0 = vld [vmem:[#allocation3] sm:$0xff]  ;;  %v1359_v3 = vld [vmem:[#allocation3 + $0x88] sm:$0xff]  ;;  %v1331_v18 = vmov 0.0  }
   0x6   :  { %v1351_v1 = vld [vmem:[#allocation3 + $0x80] sm:$0xff]  ;;  %81 = vmatpush.msra.mxu0 %v36_v0  ;;  %v1361_v4 = vld [vmem:[#allocation3 + $0x70] sm:$0xff]  ;;  %1188 = vmatpush.msra.mxu1 %v36_v0  ;;  %v1369_v6 = vld [vmem:[#allocation3 + $0x78] sm:$0xff]  ;;  %vm192_vm10 = vcmask 523264  }
   0x7   :  { %v1356_v2 = vld [vmem:[%s1682_s0] sm:$0xff]  ;;  %204 = vmatpush.msra.mxu2 %v1351_v1  ;;  %v1371_v7 = vld [vmem:[#allocation3 + $0x50] sm:$0xff]  ;;  %v1373_v8 = vld [vmem:[#allocation3 + $0x68] sm:$0xff]  ;;  %328 = vmatpush.msra.mxu3 %v1359_v3 }
   0x8   :  { %1135 = vmatmul.msk.f32.vlgmr.msra.gmra.mxu0 %vm38_vm0, %v1356_v2  ;;  %v1365_v5 = vld [vmem:[#allocation3 + $0x60] sm:$0xff]  ;;  %v1380_v10 = vld [vmem:[#allocation3 + $0x58] sm:$0xff]  ;;  %v1387_v11 = vld [vmem:[%s1682_s0 + $0x8] sm:$0xff] }
   0x9   :  { %224 = vmatpush.msrb.mxu0 %v1359_v3  ;;  %205 = vmatpush.msra.mxu2 %v1361_v4  ;;  %v1378_v9 = vld [vmem:[#allocation3 + $0x40] sm:$0xff]  ;;  %v1390_v12 = vld [vmem:[#allocation3 + $0x30] sm:$0xff]  ;;  %v1392_v13 = vld [vmem:[#allocation3 + $0x48] sm:$0xff] }
   0xa   :  { %329 = vmatpush.msra.mxu3 %v1369_v6  ;;  %v1399_v14 = vld [vmem:[#allocation3 + $0x20] sm:$0xff]  ;;  %v1401_v15 = vld [vmem:[#allocation3 + $0x38] sm:$0xff]  ;;  %v1406_v16 = vld [vmem:[#allocation3 + $0x10] sm:$0xff] }
   0xb   :  { %206 = vmatpush.msra.mxu2 %v1365_v5  ;;  %225 = vmatpush.msrb.mxu0 %v1369_v6  ;;  %v1416_v17 = vld [vmem:[%s1682_s0 + $0x10] sm:$0xff]  ;;  %v1422_v19 = vld [vmem:[#allocation3 + $0x28] sm:$0xff]  ;;  %v30_v20 = vld [vmem:[%s1682_s0 + $0x18] sm:$0xff] }
   0xc   :  { %330 = vmatpush.msra.mxu3 %v1373_v8  ;;  %v1435_v21 = vld [vmem:[%s1682_s0 + $0x40] sm:$0xff]  ;;  %v37_v22 = vld [vmem:[#allocation3 + $0x8] sm:$0xff]  ;;  %v1441_v23 = vld [vmem:[#allocation3 + $0x18] sm:$0xff] }
   0xd   :  { %207 = vmatpush.msra.mxu2 %v1371_v7  ;;  %226 = vmatpush.msrb.mxu0 %v1373_v8  ;;  %v31_v24 = vld [vmem:[%s1682_s0 + $0x20] sm:$0xff]  ;;  %v32_v25 = vld [vmem:[%s1682_s0 + $0x28] sm:$0xff]  ;;  %v33_v26 = vld [vmem:[%s1682_s0 + $0x30] sm:$0xff] }
   0xe   :  { %331 = vmatpush.msra.mxu3 %v1380_v10  ;;  %1143 = vmatmul.msk.f32.vlgmr.msra.gmra.mxu1 %vm38_vm0, %v1435_v21  ;;  %v34_v27 = vld [vmem:[%s1682_s0 + $0x38] sm:$0xff]  ;;  %s1332_s0 = smov 64  }
   0xf   :  { %208 = vmatpush.msra.mxu2 %v1378_v9  ;;  %227 = vmatpush.msrb.mxu0 %v1380_v10 }
  0x10   :  { %1136 = vmatmul.msk.f32.gmra.mxu0 %vm38_vm0, %v1387_v11  ;;  %332 = vmatpush.msra.mxu3 %v1392_v13 }
  0x11   :  { %209 = vmatpush.msra.mxu2 %v1390_v12  ;;  %228 = vmatpush.msrb.mxu0 %v1392_v13 }
  0x12   :  { %333 = vmatpush.msra.mxu3 %v1401_v15  ;;  %125 = vmatpush.msrb.mxu1 %v37_v22 }
  0x13   :  { %210 = vmatpush.msra.mxu2 %v1399_v14  ;;  %229 = vmatpush.msrb.mxu0 %v1401_v15 }
  0x14   :  { %334 = vmatpush.msra.mxu3 %v1422_v19  ;;  %617 = vmatpush.msra.mxu1 %v1359_v3 }
  0x15   :  { %211 = vmatpush.msra.mxu2 %v1406_v16  ;;  %230 = vmatpush.msrb.mxu0 %v1422_v19 }
  0x16   :  { %212 = vmatmul.f32.vlgmr.msra.gmra.mxu2 %v1331_v18  ;;  %335 = vmatpush.msra.mxu3 %v1441_v23 }
  0x17   :  { %308 = vmatpush.msrb.mxu2 %v1351_v1  ;;  %231 = vmatpush.msrb.mxu0 %v1441_v23 }
  0x18   :  { %1137 = vmatmul.msk.f32.gmra.mxu0 %vm38_vm0, %v1416_v17  ;;  %427 = vmatpush.msrb.mxu3 %v1359_v3 }
  0x19   :  { %309 = vmatpush.msrb.mxu2 %v1361_v4  ;;  %597 = vmatpush.msra.mxu0 %v1351_v1 }
  0x1a   :  { %428 = vmatpush.msrb.mxu3 %v1369_v6  ;;  %618 = vmatpush.msra.mxu1 %v1369_v6 }
  0x1b   :  { %310 = vmatpush.msrb.mxu2 %v1365_v5  ;;  %598 = vmatpush.msra.mxu0 %v1361_v4 }
  0x1c   :  { %429 = vmatpush.msrb.mxu3 %v1373_v8  ;;  %1144 = vmatmul.msk.f32.vlgmr.msrb.gmra.mxu1 %vm38_vm0, %v1356_v2 }
  0x1d   :  { %311 = vmatpush.msrb.mxu2 %v1371_v7  ;;  %619 = vmatpush.msra.mxu1 %v1373_v8 }
  0x1e   :  { %430 = vmatpush.msrb.mxu3 %v1380_v10  ;;  %599 = vmatpush.msra.mxu0 %v1365_v5 }
  0x1f   :  { %312 = vmatpush.msrb.mxu2 %v1378_v9  ;;  %620 = vmatpush.msra.mxu1 %v1380_v10 }
  0x20   :  { %1138 = vmatmul.msk.f32.gmra.mxu0 %vm38_vm0, %v30_v20  ;;  %431 = vmatpush.msrb.mxu3 %v1392_v13 }
  0x21   :  { %313 = vmatpush.msrb.mxu2 %v1390_v12  ;;  %600 = vmatpush.msra.mxu0 %v1371_v7 }
  0x22   :  { %432 = vmatpush.msrb.mxu3 %v1401_v15  ;;  %621 = vmatpush.msra.mxu1 %v1392_v13 }
  0x23   :  { %314 = vmatpush.msrb.mxu2 %v1399_v14  ;;  %601 = vmatpush.msra.mxu0 %v1378_v9 }
  0x24   :  { %433 = vmatpush.msrb.mxu3 %v1422_v19  ;;  %1145 = vmatmul.msk.f32.gmra.mxu1 %vm38_vm0, %v1387_v11 }
  0x25   :  { %315 = vmatpush.msrb.mxu2 %v1406_v16  ;;  %622 = vmatpush.msra.mxu1 %v1401_v15 }
  0x26   :  { %434 = vmatpush.msrb.mxu3 %v1441_v23  ;;  %602 = vmatpush.msra.mxu0 %v1390_v12 }
  0x27   :  { %407 = vmatpush.msra.mxu2 %v1351_v1  ;;  %623 = vmatpush.msra.mxu1 %v1422_v19 }
  0x28   :  { %1139 = vmatmul.msk.f32.gmra.mxu0 %vm38_vm0, %v31_v24 }
  0x29   :  { %408 = vmatpush.msra.mxu2 %v1361_v4  ;;  %603 = vmatpush.msra.mxu0 %v1399_v14 }
  0x2a   :  { %624 = vmatpush.msra.mxu1 %v1441_v23 }
  0x2b   :  { %409 = vmatpush.msra.mxu2 %v1365_v5  ;;  %604 = vmatpush.msra.mxu0 %v1406_v16 }
  0x2c   :  { %807 = vmatpush.msrb.mxu1 %v1359_v3 }
  0x2d   :  { %410 = vmatpush.msra.mxu2 %v1371_v7  ;;  %1146 = vmatmul.msk.f32.gmra.mxu1 %vm38_vm0, %v1416_v17 }
  0x2e   :  { %808 = vmatpush.msrb.mxu1 %v1369_v6 }
  0x2f   :  { %411 = vmatpush.msra.mxu2 %v1378_v9 }
  0x30   :  { %1140 = vmatmul.msk.f32.gmra.mxu0 %vm38_vm0, %v32_v25  ;;  %809 = vmatpush.msrb.mxu1 %v1373_v8 }
  0x31   :  { %412 = vmatpush.msra.mxu2 %v1390_v12 }
  0x32   :  { %810 = vmatpush.msrb.mxu1 %v1380_v10 }
  0x33   :  { %413 = vmatpush.msra.mxu2 %v1399_v14 }
  0x34   :  { %811 = vmatpush.msrb.mxu1 %v1392_v13 }
  0x35   :  { %414 = vmatpush.msra.mxu2 %v1406_v16  ;;  %1147 = vmatmul.msk.f32.gmra.mxu1 %vm38_vm0, %v30_v20 }
  0x36   :  { %812 = vmatpush.msrb.mxu1 %v1401_v15 }
  0x38   :  { %1141 = vmatmul.msk.f32.gmra.mxu0 %vm38_vm0, %v33_v26  ;;  %813 = vmatpush.msrb.mxu1 %v1422_v19 }
  0x3a   :  { %814 = vmatpush.msrb.mxu1 %v1441_v23 }
  0x3d   :  { %1148 = vmatmul.msk.f32.gmra.mxu1 %vm38_vm0, %v31_v24 }
  0x40   :  { %1142 = vmatmul.msk.f32.gmra.mxu0 %vm38_vm0, %v34_v27 }
  0x45   :  { %1149 = vmatmul.msk.f32.gmra.mxu1 %vm38_vm0, %v32_v25 }
  0x48   :  { %232 = vmatmul.f32.vlgmr.msrb.gmra.mxu0 %v1331_v18 }
  0x49   :  { %787 = vmatpush.msrb.mxu0 %v1351_v1 }
  0x4b   :  { %788 = vmatpush.msrb.mxu0 %v1361_v4 }
  0x4d   :  { %789 = vmatpush.msrb.mxu0 %v1365_v5  ;;  %1150 = vmatmul.msk.f32.gmra.mxu1 %vm38_vm0, %v33_v26 }
  0x4f   :  { %790 = vmatpush.msrb.mxu0 %v1371_v7 }
  0x51   :  { %791 = vmatpush.msrb.mxu0 %v1378_v9 }
  0x53   :  { %792 = vmatpush.msrb.mxu0 %v1390_v12 }
  0x55   :  { %793 = vmatpush.msrb.mxu0 %v1399_v14  ;;  %1151 = vmatmul.msk.f32.gmra.mxu1 %vm38_vm0, %v34_v27  ;;  %v188_v27 = vlaneseq }
  0x57   :  { %794 = vmatpush.msrb.mxu0 %v1406_v16 }
  0x5d   :  { %1152 = vmatmul.msk.f32.gmra.mxu1 %vm38_vm0, %v1435_v21 }
  0x85   :  { %v83_v28 = vpop.f32.mrf.mxu0 }
  0x8b   :  { %v1538_v41 = vpop.f32.mrf.mxu1 }
  0x8d   :  { %v1526_v29 = vpop.f32.mrf.mxu0 }
  0x95   :  { %v1528_v30 = vpop.f32.mrf.mxu0 }
  0x99   :  { %v213_v31 = vpop.f32.mrf.mxu2  ;;  %v127_v45 = vpop.f32.mrf.mxu1 }
  0x9a   :  { %v214_v32 = vadd.f32 %v213_v31, %v83_v28  ;;  %v189_v28 = vand.u32 127, %v188_v27 }
  0x9c   :  { %v1153_v34 = vmul.f32 -1.442695, %v214_v32  ;;  %vm284_vm9 = vcmp.lt.s32.totalorder %v189_v28, 32 }
  0x9d   :  { %v1530_v33 = vpop.f32.mrf.mxu0 }
  0x9e   :  { %1194 = vpow2.f32 %v1153_v34 }
  0xa4   :  { %v1195_v36 = vpop.eup %1194 }
  0xa5   :  { %v1532_v35 = vpop.f32.mrf.mxu0  ;;  %v239_v38 = vadd.f32 1.0, %v1195_v36 }
  0xa7   :  { %1196 = vrcp.f32 %v239_v38  ;;  %v251_v50 = vand.u32 2147483648, %v239_v38  ;;  %vm245_vm2 = vweird.f32 %v239_v38  ;;  %v249_v51 = vand.u32 2147483647, %v239_v38 }
  0xa9   :  { %v252_v53 = vor.u32 1.1754944e-38, %v251_v50  ;;  %vm250_vm4 = vcmp.eq.f32.partialorder %v249_v51, 8.507059e+37 }
  0xad   :  { %v1534_v37 = vpop.f32.mrf.mxu0  ;;  %v1197_v40 = vpop.eup %1196 }
  0xae   :  { %v241_v42 = vmul.f32 %v1197_v40, %v239_v38  ;;  %vm246_vm1 = vweird.f32 %v1197_v40 }
  0xaf   :  { %vm247_vm3 = vmor %vm245_vm2, %vm246_vm1 }
  0xb0   :  { %v242_v44 = vsub.f32 1.0, %v241_v42 }
  0xb2   :  { %v243_v46 = vmul.f32 %v1197_v40, %v242_v44 }
  0xb4   :  { %v244_v49 = vadd.f32 %v1197_v40, %v243_v46  ;;  %v130_v46 = vpop.f32.mrf.mxu1 }
  0xb5   :  { %v1536_v39 = vpop.f32.mrf.mxu0 }
  0xb6   :  { %v248_v52 = vsel %vm247_vm3, %v1197_v40, %v244_v49 }
  0xb7   :  { %v253_v55 = vsel %vm250_vm4, %v252_v53, %v248_v52 }
  0xb8   :  { %v255_v0 = vmul.f32 0.0, %v253_v55 }
  0xbd   :  { %v1540_v43 = vpop.f32.mrf.mxu0 }
  0xc5   :  { %v233_v47 = vpop.f32.mrf.mxu0 }
  0xc6   :  { %v234_v48 = vadd.f32 %v233_v47, %v127_v45 }
  0xc8   :  { %1198 = vtanh.f32 %v234_v48  ;;  %v1154_v57 = vmul.f32 -1.442695, %v234_v48 }
  0xca   :  { %1200 = vpow2.f32 %v1154_v57 }
  0xce   :  { %v1199_v54 = vpop.eup %1198 }
  0xcf   :  { %v257_v56 = vmul.f32 %v1199_v54, %v253_v55 }
  0xd0   :  { %v1201_v58 = vpop.eup %1200 }
  0xd1   :  { %259 = vrot.lane.b32.xlu0 %v257_v56, %s1332_s0  ;;  %v266_v59 = vadd.f32 1.0, %v1201_v58 }
  0xd3   :  { %1202 = vrcp.f32 %v266_v59  ;;  %v278_v18 = vand.u32 2147483648, %v266_v59  ;;  %vm272_vm6 = vweird.f32 %v266_v59  ;;  %v276_v20 = vand.u32 2147483647, %v266_v59 }
  0xd5   :  { %v279_v22 = vor.u32 1.1754944e-38, %v278_v18  ;;  %vm277_vm8 = vcmp.eq.f32.partialorder %v276_v20, 8.507059e+37 }
  0xd9   :  { %v1203_v60 = vpop.eup %1202 }
  0xda   :  { %v268_v61 = vmul.f32 %v1203_v60, %v266_v59  ;;  %vm273_vm5 = vweird.f32 %v1203_v60 }
  0xdb   :  { %vm274_vm7 = vmor %vm272_vm6, %vm273_vm5 }
  0xdc   :  { %v269_v62 = vsub.f32 1.0, %v268_v61 }
  0xde   :  { %v270_v63 = vmul.f32 %v1203_v60, %v269_v62 }
  0xe0   :  { %v271_v17 = vadd.f32 %v1203_v60, %v270_v63 }
  0xe2   :  { %v275_v21 = vsel %vm274_vm7, %v1203_v60, %v271_v17 }
  0xe3   :  { %v280_v25 = vsel %vm277_vm8, %v279_v22, %v275_v21 }
 0x143   :  { %v260_v2 = vpop.permute.xlu0 %259 }
 0x144   :  { %v262_v11 = vadd.f32 %v260_v2, %v255_v0 }
 0x146   :  { %1204 = vtanh.f32 %v262_v11  ;;  %291 = vrot.lane.b32.xlu1 %v262_v11, %s1332_s0 }
 0x14c   :  { %v1205_v24 = vpop.eup %1204 }
 0x14d   :  { %v283_v26 = vmul.f32 %v1205_v24, %v280_v25 }
 0x14f   :  { %286 = vrot.lane.b32.xlu0 %v283_v26, %s1332_s0 }
 0x1b8   :  { %v292_v31 = vpop.permute.xlu1 %291 }
 0x1b9   :  { %v294_v32 = vsel %vm284_vm9, %v292_v31, 0.0 }
 0x1ba   :  { %360 = vrot.lane.b32.xlu1 %v294_v32, %s1332_s0 }
 0x1c1   :  { %v287_v34 = vpop.permute.xlu0 %286 }
 0x1c2   :  { %v289_v36 = vsel %vm284_vm9, %v287_v34, 0.0 }
 0x1c3   :  { %1155 = vmatmul.msk.f32.vlgmr.msrb.gmra.mxu2 %vm192_vm10, %v289_v36  ;;  %1156 = vmatmul.msk.f32.vlgmr.msra.gmra.mxu3 %vm192_vm10, %v289_v36 }
 0x1c4   :  { %502 = vmatpush.msrb.mxu2 %v1351_v1  ;;  %522 = vmatpush.msra.mxu3 %v1359_v3 }
 0x1c6   :  { %503 = vmatpush.msrb.mxu2 %v1361_v4  ;;  %523 = vmatpush.msra.mxu3 %v1369_v6 }
 0x1c8   :  { %504 = vmatpush.msrb.mxu2 %v1365_v5  ;;  %524 = vmatpush.msra.mxu3 %v1373_v8 }
 0x1ca   :  { %505 = vmatpush.msrb.mxu2 %v1371_v7  ;;  %525 = vmatpush.msra.mxu3 %v1380_v10 }
 0x1cc   :  { %506 = vmatpush.msrb.mxu2 %v1378_v9  ;;  %526 = vmatpush.msra.mxu3 %v1392_v13 }
 0x1ce   :  { %507 = vmatpush.msrb.mxu2 %v1390_v12  ;;  %527 = vmatpush.msra.mxu3 %v1401_v15 }
 0x1d0   :  { %508 = vmatpush.msrb.mxu2 %v1399_v14  ;;  %528 = vmatpush.msra.mxu3 %v1422_v19 }
 0x1d2   :  { %509 = vmatpush.msrb.mxu2 %v1406_v16  ;;  %529 = vmatpush.msra.mxu3 %v1441_v23 }
 0x22c   :  { %v361_v11 = vpop.permute.xlu1 %360 }
 0x246   :  { %v317_v38 = vpop.f32.mrf.mxu2  ;;  %v337_v47 = vpop.f32.mrf.mxu3 }
 0x247   :  { %v318_v40 = vadd.f32 %v317_v38, %v1526_v29  ;;  %v338_v49 = vadd.f32 %v337_v47, %v130_v46 }
 0x249   :  { %v1157_v42 = vmul.f32 -1.442695, %v318_v40  ;;  %v1158_v60 = vmul.f32 -1.442695, %v338_v49 }
 0x24b   :  { %1206 = vpow2.f32 %v1157_v42 }
 0x251   :  { %v1207_v44 = vpop.eup %1206 }
 0x252   :  { %v343_v45 = vadd.f32 1.0, %v1207_v44 }
 0x254   :  { %1208 = vrcp.f32 %v343_v45  ;;  %v355_v52 = vand.u32 2147483648, %v343_v45  ;;  %v353_v54 = vand.u32 2147483647, %v343_v45  ;;  %vm349_vm12 = vweird.f32 %v343_v45 }
 0x255   :  { %1210 = vtanh.f32 %v338_v49 }
 0x256   :  { %v356_v29 = vor.u32 1.1754944e-38, %v355_v52  ;;  %vm354_vm14 = vcmp.eq.f32.partialorder %v353_v54, 8.507059e+37  ;;  %1212 = vpow2.f32 %v1158_v60 }
 0x25a   :  { %v1209_v48 = vpop.eup %1208 }
 0x25b   :  { %v345_v50 = vmul.f32 %v1209_v48, %v343_v45  ;;  %vm350_vm11 = vweird.f32 %v1209_v48  ;;  %v1211_v57 = vpop.eup %1210  ;;  %v133_v45 = vpop.f32.mrf.mxu1 }
 0x25c   :  { %vm351_vm13 = vmor %vm349_vm12, %vm350_vm11  ;;  %v1213_v61 = vpop.eup %1212 }
 0x25d   :  { %v346_v51 = vsub.f32 1.0, %v345_v50  ;;  %v374_v62 = vadd.f32 1.0, %v1213_v61 }
 0x25f   :  { %v347_v53 = vmul.f32 %v1209_v48, %v346_v51  ;;  %1214 = vrcp.f32 %v374_v62  ;;  %v386_v24 = vand.u32 2147483648, %v374_v62  ;;  %vm380_vm0 = vweird.f32 %v374_v62 }
 0x260   :  { %v384_v25 = vand.u32 2147483647, %v374_v62 }
 0x261   :  { %v348_v55 = vadd.f32 %v1209_v48, %v347_v53  ;;  %v387_v27 = vor.u32 1.1754944e-38, %v386_v24 }
 0x262   :  { %vm385_vm2 = vcmp.eq.f32.partialorder %v384_v25, 8.507059e+37 }
 0x263   :  { %v352_v56 = vsel %vm351_vm13, %v1209_v48, %v348_v55 }
 0x264   :  { %v357_v58 = vsel %vm354_vm14, %v356_v29, %v352_v56 }
 0x265   :  { %v365_v59 = vmul.f32 %v1211_v57, %v357_v58  ;;  %v1215_v63 = vpop.eup %1214  ;;  %v363_v18 = vmul.f32 %v361_v11, %v357_v58 }
 0x266   :  { %v376_v0 = vmul.f32 %v1215_v63, %v374_v62  ;;  %vm381_vm15 = vweird.f32 %v1215_v63 }
 0x267   :  { %367 = vrot.lane.b32.xlu2 %v365_v59, %s1332_s0  ;;  %vm382_vm1 = vmor %vm380_vm0, %vm381_vm15 }
 0x268   :  { %v377_v2 = vsub.f32 1.0, %v376_v0 }
 0x26a   :  { %v378_v17 = vmul.f32 %v1215_v63, %v377_v2 }
 0x26c   :  { %v379_v22 = vadd.f32 %v1215_v63, %v378_v17 }
 0x26e   :  { %v383_v26 = vsel %vm382_vm1, %v1215_v63, %v379_v22 }
 0x26f   :  { %v388_v31 = vsel %vm385_vm2, %v387_v27, %v383_v26 }
 0x2c1   :  { %v368_v20 = vpop.permute.xlu2 %367 }
 0x2c2   :  { %v1566_v21 = vadd.f32 %v368_v20, %v363_v18 }
 0x2c4   :  { %1216 = vtanh.f32 %v1566_v21 }
 0x2ca   :  { %v1217_v28 = vpop.eup %1216 }
 0x2cb   :  { %v391_v32 = vmul.f32 %v1217_v28, %v388_v31 }
 0x2cd   :  { %395 = vrot.lane.b32.xlu2 %v391_v32, %s1332_s0 }
 0x327   :  { %v396_v34 = vpop.permute.xlu2 %395 }
 0x328   :  { %1159 = vmatmul.msk.f32.vlgmr.msra.gmra.mxu2 %vm192_vm10, %v396_v34  ;;  %1160 = vmatmul.msk.f32.vlgmr.msrb.gmra.mxu3 %vm192_vm10, %v396_v34 }
 0x329   :  { %692 = vmatpush.msra.mxu2 %v1351_v1  ;;  %712 = vmatpush.msrb.mxu3 %v1359_v3 }
 0x32b   :  { %693 = vmatpush.msra.mxu2 %v1361_v4  ;;  %713 = vmatpush.msrb.mxu3 %v1369_v6 }
 0x32d   :  { %694 = vmatpush.msra.mxu2 %v1365_v5  ;;  %714 = vmatpush.msrb.mxu3 %v1373_v8 }
 0x32f   :  { %695 = vmatpush.msra.mxu2 %v1371_v7  ;;  %715 = vmatpush.msrb.mxu3 %v1380_v10 }
 0x331   :  { %696 = vmatpush.msra.mxu2 %v1378_v9  ;;  %716 = vmatpush.msrb.mxu3 %v1392_v13 }
 0x333   :  { %697 = vmatpush.msra.mxu2 %v1390_v12  ;;  %717 = vmatpush.msrb.mxu3 %v1401_v15 }
 0x335   :  { %698 = vmatpush.msra.mxu2 %v1399_v14  ;;  %718 = vmatpush.msrb.mxu3 %v1422_v19 }
 0x337   :  { %699 = vmatpush.msra.mxu2 %v1406_v16  ;;  %719 = vmatpush.msrb.mxu3 %v1441_v23 }
 0x3ab   :  { %v416_v36 = vpop.f32.mrf.mxu2  ;;  %v436_v46 = vpop.f32.mrf.mxu3 }
 0x3ac   :  { %v417_v38 = vadd.f32 %v416_v36, %v1528_v30  ;;  %v437_v48 = vadd.f32 %v436_v46, %v133_v45 }
 0x3ae   :  { %v1161_v40 = vmul.f32 -1.442695, %v417_v38  ;;  %v1162_v58 = vmul.f32 -1.442695, %v437_v48 }
 0x3b0   :  { %1218 = vpow2.f32 %v1161_v40  ;;  %v136_v40 = vpop.f32.mrf.mxu1 }
 0x3b6   :  { %v1219_v42 = vpop.eup %1218 }
 0x3b7   :  { %v442_v44 = vadd.f32 1.0, %v1219_v42 }
 0x3b9   :  { %1220 = vrcp.f32 %v442_v44  ;;  %v454_v51 = vand.u32 2147483648, %v442_v44  ;;  %v452_v53 = vand.u32 2147483647, %v442_v44  ;;  %vm448_vm4 = vweird.f32 %v442_v44 }
 0x3ba   :  { %1222 = vtanh.f32 %v437_v48 }
 0x3bb   :  { %v455_v30 = vor.u32 1.1754944e-38, %v454_v51  ;;  %vm453_vm6 = vcmp.eq.f32.partialorder %v452_v53, 8.507059e+37  ;;  %1224 = vpow2.f32 %v1162_v58 }
 0x3bf   :  { %v1221_v47 = vpop.eup %1220 }
 0x3c0   :  { %v444_v49 = vmul.f32 %v1221_v47, %v442_v44  ;;  %vm449_vm3 = vweird.f32 %v1221_v47  ;;  %v1223_v29 = vpop.eup %1222 }
 0x3c1   :  { %vm450_vm5 = vmor %vm448_vm4, %vm449_vm3  ;;  %v1225_v59 = vpop.eup %1224 }
 0x3c2   :  { %v445_v50 = vsub.f32 1.0, %v444_v49  ;;  %v469_v60 = vadd.f32 1.0, %v1225_v59 }
 0x3c4   :  { %v446_v52 = vmul.f32 %v1221_v47, %v445_v50  ;;  %1226 = vrcp.f32 %v469_v60  ;;  %v481_v20 = vand.u32 2147483648, %v469_v60  ;;  %vm475_vm8 = vweird.f32 %v469_v60 }
 0x3c5   :  { %v479_v22 = vand.u32 2147483647, %v469_v60 }
 0x3c6   :  { %v447_v54 = vadd.f32 %v1221_v47, %v446_v52  ;;  %v482_v25 = vor.u32 1.1754944e-38, %v481_v20 }
 0x3c7   :  { %vm480_vm11 = vcmp.eq.f32.partialorder %v479_v22, 8.507059e+37 }
 0x3c8   :  { %v451_v55 = vsel %vm450_vm5, %v1221_v47, %v447_v54 }
 0x3c9   :  { %v456_v56 = vsel %vm453_vm6, %v455_v30, %v451_v55 }
 0x3ca   :  { %v460_v57 = vmul.f32 %v1223_v29, %v456_v56  ;;  %v1227_v61 = vpop.eup %1226  ;;  %v458_v2 = vmul.f32 %v456_v56, %v1566_v21 }
 0x3cb   :  { %v471_v62 = vmul.f32 %v1227_v61, %v469_v60  ;;  %vm476_vm7 = vweird.f32 %v1227_v61 }
 0x3cc   :  { %462 = vrot.lane.b32.xlu0 %v460_v57, %s1332_s0  ;;  %vm477_vm9 = vmor %vm475_vm8, %vm476_vm7 }
 0x3cd   :  { %v472_v63 = vsub.f32 1.0, %v471_v62 }
 0x3cf   :  { %v473_v0 = vmul.f32 %v1227_v61, %v472_v63 }
 0x3d1   :  { %v474_v18 = vadd.f32 %v1227_v61, %v473_v0 }
 0x3d3   :  { %v478_v24 = vsel %vm477_vm9, %v1227_v61, %v474_v18 }
 0x3d4   :  { %v483_v27 = vsel %vm480_vm11, %v482_v25, %v478_v24 }
 0x43e   :  { %v463_v11 = vpop.permute.xlu0 %462 }
 0x43f   :  { %v1591_v17 = vadd.f32 %v463_v11, %v458_v2 }
 0x441   :  { %1228 = vtanh.f32 %v1591_v17 }
 0x447   :  { %v1229_v26 = vpop.eup %1228 }
 0x448   :  { %v486_v28 = vmul.f32 %v1229_v26, %v483_v27 }
 0x44a   :  { %490 = vrot.lane.b32.xlu1 %v486_v28, %s1332_s0 }
 0x4bc   :  { %v491_v21 = vpop.permute.xlu1 %490 }
 0x4bd   :  { %1163 = vmatmul.msk.f32.vlgmr.msrb.gmra.mxu2 %vm192_vm10, %v491_v21  ;;  %1164 = vmatmul.msk.f32.vlgmr.msra.gmra.mxu3 %vm192_vm10, %v491_v21 }
 0x4be   :  { %882 = vmatpush.msrb.mxu2 %v1351_v1  ;;  %902 = vmatpush.msra.mxu3 %v1359_v3 }
 0x4c0   :  { %883 = vmatpush.msrb.mxu2 %v1361_v4  ;;  %903 = vmatpush.msra.mxu3 %v1369_v6 }
 0x4c2   :  { %884 = vmatpush.msrb.mxu2 %v1365_v5  ;;  %904 = vmatpush.msra.mxu3 %v1373_v8 }
 0x4c4   :  { %885 = vmatpush.msrb.mxu2 %v1371_v7  ;;  %905 = vmatpush.msra.mxu3 %v1380_v10 }
 0x4c6   :  { %886 = vmatpush.msrb.mxu2 %v1378_v9  ;;  %906 = vmatpush.msra.mxu3 %v1392_v13 }
 0x4c8   :  { %887 = vmatpush.msrb.mxu2 %v1390_v12  ;;  %907 = vmatpush.msra.mxu3 %v1401_v15 }
 0x4ca   :  { %888 = vmatpush.msrb.mxu2 %v1399_v14  ;;  %908 = vmatpush.msra.mxu3 %v1422_v19 }
 0x4cc   :  { %889 = vmatpush.msrb.mxu2 %v1406_v16  ;;  %909 = vmatpush.msra.mxu3 %v1441_v23 }
 0x540   :  { %v511_v31 = vpop.f32.mrf.mxu2  ;;  %v531_v42 = vpop.f32.mrf.mxu3 }
 0x541   :  { %v512_v32 = vadd.f32 %v511_v31, %v1530_v33  ;;  %v532_v45 = vadd.f32 %v531_v42, %v136_v40 }
 0x543   :  { %v1165_v34 = vmul.f32 -1.442695, %v512_v32  ;;  %v1166_v55 = vmul.f32 -1.442695, %v532_v45 }
 0x545   :  { %1230 = vpow2.f32 %v1165_v34 }
 0x54b   :  { %v1231_v36 = vpop.eup %1230 }
 0x54c   :  { %v537_v38 = vadd.f32 1.0, %v1231_v36 }
 0x54e   :  { %1232 = vrcp.f32 %v537_v38  ;;  %v549_v48 = vand.u32 2147483648, %v537_v38  ;;  %v547_v50 = vand.u32 2147483647, %v537_v38  ;;  %vm543_vm13 = vweird.f32 %v537_v38 }
 0x54f   :  { %1234 = vtanh.f32 %v532_v45 }
 0x550   :  { %v550_v33 = vor.u32 1.1754944e-38, %v549_v48  ;;  %vm548_vm15 = vcmp.eq.f32.partialorder %v547_v50, 8.507059e+37  ;;  %1236 = vpow2.f32 %v1166_v55 }
 0x554   :  { %v1233_v44 = vpop.eup %1232 }
 0x555   :  { %v539_v46 = vmul.f32 %v1233_v44, %v537_v38  ;;  %vm544_vm12 = vweird.f32 %v1233_v44  ;;  %v1235_v53 = vpop.eup %1234 }
 0x556   :  { %vm545_vm14 = vmor %vm543_vm13, %vm544_vm12  ;;  %v1237_v29 = vpop.eup %1236 }
 0x557   :  { %v540_v47 = vsub.f32 1.0, %v539_v46  ;;  %v564_v56 = vadd.f32 1.0, %v1237_v29 }
 0x559   :  { %v541_v49 = vmul.f32 %v1233_v44, %v540_v47  ;;  %1238 = vrcp.f32 %v564_v56  ;;  %v576_v2 = vand.u32 2147483648, %v564_v56  ;;  %vm570_vm1 = vweird.f32 %v564_v56 }
 0x55a   :  { %v574_v11 = vand.u32 2147483647, %v564_v56 }
 0x55b   :  { %v542_v51 = vadd.f32 %v1233_v44, %v541_v49  ;;  %v577_v20 = vor.u32 1.1754944e-38, %v576_v2 }
 0x55c   :  { %vm575_vm3 = vcmp.eq.f32.partialorder %v574_v11, 8.507059e+37 }
 0x55d   :  { %v546_v52 = vsel %vm545_vm14, %v1233_v44, %v542_v51 }
 0x55e   :  { %v551_v54 = vsel %vm548_vm15, %v550_v33, %v546_v52 }
 0x55f   :  { %v555_v30 = vmul.f32 %v1235_v53, %v551_v54  ;;  %v1239_v57 = vpop.eup %1238  ;;  %v553_v61 = vmul.f32 %v551_v54, %v1591_v17 }
 0x560   :  { %v566_v58 = vmul.f32 %v1239_v57, %v564_v56  ;;  %vm571_vm0 = vweird.f32 %v1239_v57 }
 0x561   :  { %557 = vrot.lane.b32.xlu2 %v555_v30, %s1332_s0  ;;  %vm572_vm2 = vmor %vm570_vm1, %vm571_vm0 }
 0x562   :  { %v567_v59 = vsub.f32 1.0, %v566_v58 }
 0x564   :  { %v568_v60 = vmul.f32 %v1239_v57, %v567_v59 }
 0x566   :  { %v569_v0 = vadd.f32 %v1239_v57, %v568_v60 }
 0x568   :  { %v573_v18 = vsel %vm572_vm2, %v1239_v57, %v569_v0 }
 0x569   :  { %v578_v24 = vsel %vm575_vm3, %v577_v20, %v573_v18 }
 0x5bb   :  { %v558_v62 = vpop.permute.xlu2 %557 }
 0x5bc   :  { %v1616_v63 = vadd.f32 %v558_v62, %v553_v61 }
 0x5be   :  { %1240 = vtanh.f32 %v1616_v63 }
 0x5c4   :  { %v1241_v22 = vpop.eup %1240 }
 0x5c5   :  { %v581_v25 = vmul.f32 %v1241_v22, %v578_v24 }
 0x5c7   :  { %585 = vrot.lane.b32.xlu0 %v581_v25, %s1332_s0 }
 0x639   :  { %v586_v17 = vpop.permute.xlu0 %585 }
 0x63a   :  { %1167 = vmatmul.msk.f32.vlgmr.msra.gmra.mxu0 %vm192_vm10, %v586_v17  ;;  %1168 = vmatmul.msk.f32.vlgmr.msra.gmra.mxu1 %vm192_vm10, %v586_v17 }
 0x63b   :  { %977 = vmatpush.msra.mxu0 %v1351_v1  ;;  %997 = vmatpush.msra.mxu1 %v1359_v3  ;;  %v139_v1 = vpop.f32.mrf.mxu1 }
 0x63d   :  { %978 = vmatpush.msra.mxu0 %v1361_v4  ;;  %998 = vmatpush.msra.mxu1 %v1369_v6 }
 0x63f   :  { %979 = vmatpush.msra.mxu0 %v1365_v5  ;;  %999 = vmatpush.msra.mxu1 %v1373_v8 }
 0x641   :  { %980 = vmatpush.msra.mxu0 %v1371_v7  ;;  %1000 = vmatpush.msra.mxu1 %v1380_v10 }
 0x643   :  { %981 = vmatpush.msra.mxu0 %v1378_v9  ;;  %1001 = vmatpush.msra.mxu1 %v1392_v13  ;;  %v1638_v3 = vpop.f32.mrf.mxu1 }
 0x645   :  { %982 = vmatpush.msra.mxu0 %v1390_v12  ;;  %1002 = vmatpush.msra.mxu1 %v1401_v15 }
 0x647   :  { %983 = vmatpush.msra.mxu0 %v1399_v14  ;;  %1003 = vmatpush.msra.mxu1 %v1422_v19 }
 0x649   :  { %984 = vmatpush.msra.mxu0 %v1406_v16  ;;  %1004 = vmatpush.msra.mxu1 %v1441_v23 }
 0x64b   :  { %v1640_v4 = vpop.f32.mrf.mxu1 }
 0x653   :  { %v1642_v5 = vpop.f32.mrf.mxu1 }
 0x65b   :  { %v1645_v9 = vpop.f32.mrf.mxu1 }
 0x6b7   :  { %v606_v6 = vpop.f32.mrf.mxu0  ;;  %v626_v13 = vpop.f32.mrf.mxu1 }
 0x6b8   :  { %v607_v7 = vadd.f32 %v606_v6, %v1532_v35  ;;  %v627_v15 = vadd.f32 %v626_v13, %v139_v1 }
 0x6ba   :  { %v1169_v8 = vmul.f32 -1.442695, %v607_v7  ;;  %v1170_v36 = vmul.f32 -1.442695, %v627_v15 }
 0x6bc   :  { %1242 = vpow2.f32 %v1169_v8 }
 0x6c2   :  { %v1243_v10 = vpop.eup %1242 }
 0x6c3   :  { %v632_v12 = vadd.f32 1.0, %v1243_v10 }
 0x6c5   :  { %1244 = vrcp.f32 %v632_v12  ;;  %v644_v23 = vand.u32 2147483648, %v632_v12  ;;  %v642_v27 = vand.u32 2147483647, %v632_v12  ;;  %vm638_vm5 = vweird.f32 %v632_v12 }
 0x6c6   :  { %1246 = vtanh.f32 %v627_v15 }
 0x6c7   :  { %v645_v35 = vor.u32 1.1754944e-38, %v644_v23  ;;  %vm643_vm7 = vcmp.eq.f32.partialorder %v642_v27, 8.507059e+37  ;;  %1248 = vpow2.f32 %v1170_v36 }
 0x6cb   :  { %v1245_v14 = vpop.eup %1244 }
 0x6cc   :  { %v634_v16 = vmul.f32 %v1245_v14, %v632_v12  ;;  %vm639_vm4 = vweird.f32 %v1245_v14  ;;  %v1247_v31 = vpop.eup %1246 }
 0x6cd   :  { %vm640_vm6 = vmor %vm638_vm5, %vm639_vm4  ;;  %v1249_v38 = vpop.eup %1248 }
 0x6ce   :  { %v635_v19 = vsub.f32 1.0, %v634_v16  ;;  %v659_v40 = vadd.f32 1.0, %v1249_v38 }
 0x6d0   :  { %v636_v26 = vmul.f32 %v1245_v14, %v635_v19  ;;  %1250 = vrcp.f32 %v659_v40  ;;  %v671_v51 = vand.u32 2147483648, %v659_v40  ;;  %vm665_vm9 = vweird.f32 %v659_v40 }
 0x6d1   :  { %v669_v33 = vand.u32 2147483647, %v659_v40 }
 0x6d2   :  { %v637_v28 = vadd.f32 %v1245_v14, %v636_v26  ;;  %v672_v53 = vor.u32 1.1754944e-38, %v671_v51 }
 0x6d3   :  { %vm670_vm12 = vcmp.eq.f32.partialorder %v669_v33, 8.507059e+37 }
 0x6d4   :  { %v641_v21 = vsel %vm640_vm6, %v1245_v14, %v637_v28 }
 0x6d5   :  { %v646_v32 = vsel %vm643_vm7, %v645_v35, %v641_v21 }
 0x6d6   :  { %v650_v34 = vmul.f32 %v1247_v31, %v646_v32  ;;  %v1251_v42 = vpop.eup %1250  ;;  %v648_v47 = vmul.f32 %v646_v32, %v1616_v63 }
 0x6d7   :  { %v661_v44 = vmul.f32 %v1251_v42, %v659_v40  ;;  %vm666_vm8 = vweird.f32 %v1251_v42 }
 0x6d8   :  { %652 = vrot.lane.b32.xlu1 %v650_v34, %s1332_s0  ;;  %vm667_vm11 = vmor %vm665_vm9, %vm666_vm8 }
 0x6d9   :  { %v662_v45 = vsub.f32 1.0, %v661_v44 }
 0x6db   :  { %v663_v46 = vmul.f32 %v1251_v42, %v662_v45 }
 0x6dd   :  { %v664_v50 = vadd.f32 %v1251_v42, %v663_v46 }
 0x6df   :  { %v668_v52 = vsel %vm667_vm11, %v1251_v42, %v664_v50 }
 0x6e0   :  { %v673_v30 = vsel %vm670_vm12, %v672_v53, %v668_v52 }
 0x74a   :  { %v653_v48 = vpop.permute.xlu1 %652 }
 0x74b   :  { %v655_v49 = vadd.f32 %v653_v48, %v648_v47 }
 0x74d   :  { %1252 = vtanh.f32 %v655_v49 }
 0x753   :  { %v1253_v54 = vpop.eup %1252 }
 0x754   :  { %v676_v55 = vmul.f32 %v1253_v54, %v673_v30 }
 0x756   :  { %680 = vrot.lane.b32.xlu2 %v676_v55, %s1332_s0 }
 0x7b0   :  { %v681_v29 = vpop.permute.xlu2 %680 }
 0x7b1   :  { %1171 = vmatmul.msk.f32.vlgmr.msra.gmra.mxu2 %vm192_vm10, %v681_v29  ;;  %1172 = vmatmul.msk.f32.vlgmr.msrb.gmra.mxu3 %vm192_vm10, %v681_v29 }
 0x834   :  { %v701_v56 = vpop.f32.mrf.mxu2  ;;  %v721_v61 = vpop.f32.mrf.mxu3 }
 0x835   :  { %v702_v57 = vadd.f32 %v701_v56, %v1534_v37  ;;  %v722_v63 = vadd.f32 %v721_v61, %v1638_v3 }
 0x837   :  { %v1173_v58 = vmul.f32 -1.442695, %v702_v57  ;;  %v1174_v6 = vmul.f32 -1.442695, %v722_v63 }
 0x839   :  { %1254 = vpow2.f32 %v1173_v58 }
 0x83f   :  { %v1255_v59 = vpop.eup %1254 }
 0x840   :  { %v727_v60 = vadd.f32 1.0, %v1255_v59 }
 0x842   :  { %1256 = vrcp.f32 %v727_v60  ;;  %v739_v11 = vand.u32 2147483648, %v727_v60  ;;  %v737_v20 = vand.u32 2147483647, %v727_v60  ;;  %vm733_vm14 = vweird.f32 %v727_v60 }
 0x843   :  { %1258 = vtanh.f32 %v722_v63 }
 0x844   :  { %v740_v37 = vor.u32 1.1754944e-38, %v739_v11  ;;  %vm738_vm0 = vcmp.eq.f32.partialorder %v737_v20, 8.507059e+37  ;;  %1260 = vpow2.f32 %v1174_v6 }
 0x848   :  { %v1257_v62 = vpop.eup %1256 }
 0x849   :  { %v729_v0 = vmul.f32 %v1257_v62, %v727_v60  ;;  %vm734_vm13 = vweird.f32 %v1257_v62  ;;  %v1259_v25 = vpop.eup %1258 }
 0x84a   :  { %vm735_vm15 = vmor %vm733_vm14, %vm734_vm13  ;;  %v1261_v3 = vpop.eup %1260 }
 0x84b   :  { %v730_v2 = vsub.f32 1.0, %v729_v0  ;;  %v754_v7 = vadd.f32 1.0, %v1261_v3 }
 0x84d   :  { %v731_v18 = vmul.f32 %v1257_v62, %v730_v2  ;;  %1262 = vrcp.f32 %v754_v7  ;;  %v766_v23 = vand.u32 2147483648, %v754_v7  ;;  %vm760_vm2 = vweird.f32 %v754_v7 }
 0x84e   :  { %v764_v26 = vand.u32 2147483647, %v754_v7 }
 0x84f   :  { %v732_v22 = vadd.f32 %v1257_v62, %v731_v18  ;;  %v767_v28 = vor.u32 1.1754944e-38, %v766_v23 }
 0x850   :  { %vm765_vm4 = vcmp.eq.f32.partialorder %v764_v26, 8.507059e+37 }
 0x851   :  { %v736_v24 = vsel %vm735_vm15, %v1257_v62, %v732_v22 }
 0x852   :  { %v741_v17 = vsel %vm738_vm0, %v740_v37, %v736_v24 }
 0x853   :  { %v745_v1 = vmul.f32 %v1259_v25, %v741_v17  ;;  %v1263_v8 = vpop.eup %1262  ;;  %v743_v14 = vmul.f32 %v741_v17, %v655_v49 }
 0x854   :  { %v756_v10 = vmul.f32 %v1263_v8, %v754_v7  ;;  %vm761_vm1 = vweird.f32 %v1263_v8 }
 0x855   :  { %747 = vrot.lane.b32.xlu0 %v745_v1, %s1332_s0  ;;  %vm762_vm3 = vmor %vm760_vm2, %vm761_vm1 }
 0x856   :  { %v757_v12 = vsub.f32 1.0, %v756_v10 }
 0x858   :  { %v758_v13 = vmul.f32 %v1263_v8, %v757_v12 }
 0x85a   :  { %v759_v19 = vadd.f32 %v1263_v8, %v758_v13 }
 0x85c   :  { %v763_v27 = vsel %vm762_vm3, %v1263_v8, %v759_v19 }
 0x85d   :  { %v768_v21 = vsel %vm765_vm4, %v767_v28, %v763_v27 }
 0x8c7   :  { %v748_v15 = vpop.permute.xlu0 %747 }
 0x8c8   :  { %v750_v16 = vadd.f32 %v748_v15, %v743_v14 }
 0x8ca   :  { %1264 = vtanh.f32 %v750_v16 }
 0x8d0   :  { %v1265_v35 = vpop.eup %1264 }
 0x8d1   :  { %v771_v31 = vmul.f32 %v1265_v35, %v768_v21 }
 0x8d3   :  { %775 = vrot.lane.b32.xlu1 %v771_v31, %s1332_s0 }
 0x945   :  { %v776_v32 = vpop.permute.xlu1 %775 }
 0x946   :  { %1175 = vmatmul.msk.f32.vlgmr.msrb.gmra.mxu0 %vm192_vm10, %v776_v32  ;;  %1176 = vmatmul.msk.f32.vlgmr.msrb.gmra.mxu1 %vm192_vm10, %v776_v32 }
 0x9c3   :  { %v796_v34 = vpop.f32.mrf.mxu0  ;;  %v816_v44 = vpop.f32.mrf.mxu1 }
 0x9c4   :  { %v797_v36 = vadd.f32 %v796_v34, %v1536_v39  ;;  %v817_v46 = vadd.f32 %v816_v44, %v1640_v4 }
 0x9c6   :  { %v1177_v38 = vmul.f32 -1.442695, %v797_v36  ;;  %v1178_v55 = vmul.f32 -1.442695, %v817_v46 }
 0x9c8   :  { %1266 = vpow2.f32 %v1177_v38 }
 0x9ce   :  { %v1267_v40 = vpop.eup %1266 }
 0x9cf   :  { %v822_v42 = vadd.f32 1.0, %v1267_v40 }
 0x9d1   :  { %1268 = vrcp.f32 %v822_v42  ;;  %v834_v49 = vand.u32 2147483648, %v822_v42  ;;  %v832_v51 = vand.u32 2147483647, %v822_v42  ;;  %vm828_vm6 = vweird.f32 %v822_v42 }
 0x9d2   :  { %1270 = vtanh.f32 %v817_v46 }
 0x9d3   :  { %v835_v39 = vor.u32 1.1754944e-38, %v834_v49  ;;  %vm833_vm8 = vcmp.eq.f32.partialorder %v832_v51, 8.507059e+37  ;;  %1272 = vpow2.f32 %v1178_v55 }
 0x9d7   :  { %v1269_v45 = vpop.eup %1268 }
 0x9d8   :  { %v824_v47 = vmul.f32 %v1269_v45, %v822_v42  ;;  %vm829_vm5 = vweird.f32 %v1269_v45  ;;  %v1271_v53 = vpop.eup %1270 }
 0x9d9   :  { %vm830_vm7 = vmor %vm828_vm6, %vm829_vm5  ;;  %v1273_v4 = vpop.eup %1272 }
 0x9da   :  { %v825_v48 = vsub.f32 1.0, %v824_v47  ;;  %v849_v29 = vadd.f32 1.0, %v1273_v4 }
 0x9dc   :  { %v826_v50 = vmul.f32 %v1269_v45, %v825_v48  ;;  %1274 = vrcp.f32 %v849_v29  ;;  %v861_v0 = vand.u32 2147483648, %v849_v29  ;;  %vm855_vm11 = vweird.f32 %v849_v29 }
 0x9dd   :  { %v859_v2 = vand.u32 2147483647, %v849_v29 }
 0x9de   :  { %v827_v33 = vadd.f32 %v1269_v45, %v826_v50  ;;  %v862_v18 = vor.u32 1.1754944e-38, %v861_v0 }
 0x9df   :  { %vm860_vm13 = vcmp.eq.f32.partialorder %v859_v2, 8.507059e+37 }
 0x9e0   :  { %v831_v52 = vsel %vm830_vm7, %v1269_v45, %v827_v33 }
 0x9e1   :  { %v836_v54 = vsel %vm833_vm8, %v835_v39, %v831_v52 }
 0x9e2   :  { %v840_v30 = vmul.f32 %v1271_v53, %v836_v54  ;;  %v1275_v56 = vpop.eup %1274  ;;  %v838_v60 = vmul.f32 %v836_v54, %v750_v16 }
 0x9e3   :  { %v851_v57 = vmul.f32 %v1275_v56, %v849_v29  ;;  %vm856_vm9 = vweird.f32 %v1275_v56 }
 0x9e4   :  { %842 = vrot.lane.b32.xlu2 %v840_v30, %s1332_s0  ;;  %vm857_vm12 = vmor %vm855_vm11, %vm856_vm9 }
 0x9e5   :  { %v852_v58 = vsub.f32 1.0, %v851_v57 }
 0x9e7   :  { %v853_v59 = vmul.f32 %v1275_v56, %v852_v58 }
 0x9e9   :  { %v854_v63 = vadd.f32 %v1275_v56, %v853_v59 }
 0x9eb   :  { %v858_v11 = vsel %vm857_vm12, %v1275_v56, %v854_v63 }
 0x9ec   :  { %v863_v22 = vsel %vm860_vm13, %v862_v18, %v858_v11 }
 0xa3e   :  { %v843_v61 = vpop.permute.xlu2 %842 }
 0xa3f   :  { %v845_v62 = vadd.f32 %v843_v61, %v838_v60 }
 0xa41   :  { %1276 = vtanh.f32 %v845_v62 }
 0xa47   :  { %v1277_v20 = vpop.eup %1276 }
 0xa48   :  { %v866_v37 = vmul.f32 %v1277_v20, %v863_v22  ;;  %v1064_v20 = vld [vmem:[#allocation3 + $0x100] sm:$0xff]  ;;  %v1063_v22 = vld [vmem:[#allocation3 + $0xf0] sm:$0xff] }
 0xa49   :  { %1096 = vmatpush.msra.mxu2 %v1064_v20 }
 0xa4a   :  { %870 = vrot.lane.b32.xlu0 %v866_v37, %s1332_s0  ;;  %v1062_v37 = vld [vmem:[#allocation3 + $0xe0] sm:$0xff] }
 0xa4b   :  { %1097 = vmatpush.msra.mxu2 %v1063_v22 }
 0xa4d   :  { %1098 = vmatpush.msra.mxu2 %v1062_v37 }
 0xabc   :  { %v871_v24 = vpop.permute.xlu0 %870 }
 0xabd   :  { %1179 = vmatmul.msk.f32.vlgmr.msrb.gmra.mxu2 %vm192_vm10, %v871_v24  ;;  %1180 = vmatmul.msk.f32.vlgmr.msra.gmra.mxu3 %vm192_vm10, %v871_v24  ;;  %v1061_v24 = vld [vmem:[#allocation3 + $0xd0] sm:$0xff] }
 0xabe   :  { %1099 = vmatpush.msra.mxu2 %v1061_v24 }
 0xb40   :  { %v891_v25 = vpop.f32.mrf.mxu2  ;;  %v911_v7 = vpop.f32.mrf.mxu3 }
 0xb41   :  { %v892_v17 = vadd.f32 %v891_v25, %v1540_v43  ;;  %v912_v10 = vadd.f32 %v911_v7, %v1642_v5  ;;  %v1060_v25 = vld [vmem:[#allocation3 + $0xc0] sm:$0xff]  ;;  %v1057_v7 = vld [vmem:[#allocation3 + $0x90] sm:$0xff] }
 0xb42   :  { %1100 = vmatpush.msra.mxu2 %v1060_v25 }
 0xb43   :  { %v1181_v1 = vmul.f32 -1.442695, %v892_v17  ;;  %v1182_v35 = vmul.f32 -1.442695, %v912_v10 }
 0xb45   :  { %1278 = vpow2.f32 %v1181_v1  ;;  %v1059_v1 = vld [vmem:[#allocation3 + $0xb0] sm:$0xff] }
 0xb46   :  { %1101 = vmatpush.msra.mxu2 %v1059_v1 }
 0xb4b   :  { %v1279_v6 = vpop.eup %1278 }
 0xb4c   :  { %v917_v3 = vadd.f32 1.0, %v1279_v6 }
 0xb4e   :  { %1280 = vrcp.f32 %v917_v3  ;;  %v929_v14 = vand.u32 2147483648, %v917_v3  ;;  %v927_v16 = vand.u32 2147483647, %v917_v3  ;;  %vm923_vm15 = vweird.f32 %v917_v3 }
 0xb4f   :  { %1282 = vtanh.f32 %v912_v10 }
 0xb50   :  { %v930_v43 = vor.u32 1.1754944e-38, %v929_v14  ;;  %vm928_vm1 = vcmp.eq.f32.partialorder %v927_v16, 8.507059e+37  ;;  %1284 = vpow2.f32 %v1182_v35  ;;  %v1081_v35 = vld [vmem:[#allocation3 + $0x210] sm:$0xff] }
 0xb51   :  { %1109 = vmatpush.msrb.mxu3 %v1081_v35 }
 0xb54   :  { %v1281_v8 = vpop.eup %1280 }
 0xb55   :  { %v919_v12 = vmul.f32 %v1281_v8, %v917_v3  ;;  %vm924_vm14 = vweird.f32 %v1281_v8  ;;  %v1283_v26 = vpop.eup %1282  ;;  %v1058_v3 = vld [vmem:[#allocation3 + $0xa0] sm:$0xff] }
 0xb56   :  { %vm925_vm0 = vmor %vm923_vm15, %vm924_vm14  ;;  %v1285_v5 = vpop.eup %1284  ;;  %1102 = vmatpush.msra.mxu2 %v1058_v3 }
 0xb57   :  { %v920_v13 = vsub.f32 1.0, %v919_v12  ;;  %v944_v21 = vadd.f32 1.0, %v1285_v5  ;;  %v1080_v5 = vld [vmem:[#allocation3 + $0x200] sm:$0xff] }
 0xb58   :  { %1103 = vmatpush.msra.mxu2 %v1057_v7  ;;  %1110 = vmatpush.msrb.mxu3 %v1080_v5 }
 0xb59   :  { %v921_v15 = vmul.f32 %v1281_v8, %v920_v13  ;;  %1286 = vrcp.f32 %v944_v21  ;;  %v956_v45 = vand.u32 2147483648, %v944_v21  ;;  %vm950_vm3 = vweird.f32 %v944_v21 }
 0xb5a   :  { %v954_v46 = vand.u32 2147483647, %v944_v21 }
 0xb5b   :  { %v922_v19 = vadd.f32 %v1281_v8, %v921_v15  ;;  %v957_v48 = vor.u32 1.1754944e-38, %v956_v45  ;;  %v1070_v45 = vld [vmem:[#allocation3 + $0x160] sm:$0xff] }
 0xb5c   :  { %vm955_vm5 = vcmp.eq.f32.partialorder %v954_v46, 8.507059e+37  ;;  %v1069_v46 = vld [vmem:[#allocation3 + $0x150] sm:$0xff] }
 0xb5d   :  { %v926_v23 = vsel %vm925_vm0, %v1281_v8, %v922_v19 }
 0xb5e   :  { %v931_v27 = vsel %vm928_vm1, %v930_v43, %v926_v23 }
 0xb5f   :  { %v935_v28 = vmul.f32 %v1283_v26, %v931_v27  ;;  %v1287_v31 = vpop.eup %1286  ;;  %v933_v38 = vmul.f32 %v931_v27, %v845_v62 }
 0xb60   :  { %v946_v32 = vmul.f32 %v1287_v31, %v944_v21  ;;  %vm951_vm2 = vweird.f32 %v1287_v31  ;;  %v1079_v21 = vld [vmem:[#allocation3 + $0x1f0] sm:$0xff] }
 0xb61   :  { %937 = vrot.lane.b32.xlu1 %v935_v28, %s1332_s0  ;;  %vm952_vm4 = vmor %vm950_vm3, %vm951_vm2  ;;  %1111 = vmatpush.msrb.mxu3 %v1079_v21 }
 0xb62   :  { %v947_v34 = vsub.f32 1.0, %v946_v32  ;;  %v1077_v32 = vld [vmem:[#allocation3 + $0x1d0] sm:$0xff] }
 0xb64   :  { %v948_v36 = vmul.f32 %v1287_v31, %v947_v34  ;;  %v1076_v34 = vld [vmem:[#allocation3 + $0x1c0] sm:$0xff] }
 0xb66   :  { %v949_v44 = vadd.f32 %v1287_v31, %v948_v36  ;;  %v1075_v36 = vld [vmem:[#allocation3 + $0x1b0] sm:$0xff] }
 0xb68   :  { %v953_v47 = vsel %vm952_vm4, %v1287_v31, %v949_v44  ;;  %v1078_v31 = vld [vmem:[#allocation3 + $0x1e0] sm:$0xff]  ;;  %v1071_v44 = vld [vmem:[#allocation3 + $0x170] sm:$0xff] }
 0xb69   :  { %v958_v50 = vsel %vm955_vm5, %v957_v48, %v953_v47  ;;  %1112 = vmatpush.msrb.mxu3 %v1078_v31  ;;  %v1068_v48 = vld [vmem:[#allocation3 + $0x140] sm:$0xff] }
 0xb6b   :  { %1113 = vmatpush.msrb.mxu3 %v1077_v32 }
 0xb6d   :  { %1114 = vmatpush.msrb.mxu3 %v1076_v34 }
 0xb6f   :  { %1115 = vmatpush.msrb.mxu3 %v1075_v36 }
 0xbd3   :  { %v938_v40 = vpop.permute.xlu1 %937 }
 0xbd4   :  { %v1667_v42 = vadd.f32 %v938_v40, %v933_v38  ;;  %v1074_v38 = vld [vmem:[#allocation3 + $0x1a0] sm:$0xff]  ;;  %v1073_v40 = vld [vmem:[#allocation3 + $0x190] sm:$0xff] }
 0xbd5   :  { %1116 = vmatpush.msrb.mxu3 %v1074_v38 }
 0xbd6   :  { %1288 = vtanh.f32 %v1667_v42 }
 0xbd7   :  { %1117 = vmatpush.msrb.mxu3 %v1073_v40 }
 0xbdc   :  { %v1289_v49 = vpop.eup %1288 }
 0xbdd   :  { %v961_v51 = vmul.f32 %v1289_v49, %v958_v50  ;;  %v1067_v49 = vld [vmem:[#allocation3 + $0x130] sm:$0xff]  ;;  %v1066_v50 = vld [vmem:[#allocation3 + $0x120] sm:$0xff] }
 0xbdf   :  { %965 = vrot.lane.b32.xlu2 %v961_v51, %s1332_s0  ;;  %v1065_v51 = vld [vmem:[#allocation3 + $0x110] ss:$0 sm:$0xff] }
 0xc39   :  { %v966_v33 = vpop.permute.xlu2 %965 }
 0xc3a   :  { %1183 = vmatmul.msk.f32.vlgmr.msra.gmra.mxu0 %vm192_vm10, %v966_v33  ;;  %1184 = vmatmul.msk.f32.vlgmr.msra.gmra.mxu1 %vm192_vm10, %v966_v33 }
 0xcb7   :  { %v986_v39 = vpop.f32.mrf.mxu0  ;;  %v1006_v55 = vpop.f32.mrf.mxu1 }
 0xcb8   :  { %v987_v52 = vadd.f32 %v986_v39, %v1538_v41  ;;  %v1007_v29 = vadd.f32 %v1006_v55, %v1645_v9 }
 0xcba   :  { %v1185_v53 = vmul.f32 -1.442695, %v987_v52  ;;  %v1186_v11 = vmul.f32 -1.442695, %v1007_v29 }
 0xcbc   :  { %1290 = vpow2.f32 %v1185_v53  ;;  %v1082_v53 = vld [vmem:[#allocation3 + $0x220] ss:$0 sm:$0xff] }
 0xcc2   :  { %v1291_v54 = vpop.eup %1290 }
 0xcc3   :  { %v1012_v30 = vadd.f32 1.0, %v1291_v54 }
 0xcc5   :  { %1292 = vrcp.f32 %v1012_v30  ;;  %v1024_v58 = vand.u32 2147483648, %v1012_v30  ;;  %v1022_v60 = vand.u32 2147483647, %v1012_v30  ;;  %vm1018_vm7 = vweird.f32 %v1012_v30 }
 0xcc6   :  { %1294 = vtanh.f32 %v1007_v29 }
 0xcc7   :  { %v1025_v41 = vor.u32 1.1754944e-38, %v1024_v58  ;;  %vm1023_vm9 = vcmp.eq.f32.partialorder %v1022_v60, 8.507059e+37  ;;  %1296 = vpow2.f32 %v1186_v11 }
 0xccb   :  { %v1293_v4 = vpop.eup %1292 }
 0xccc   :  { %v1014_v56 = vmul.f32 %v1293_v4, %v1012_v30  ;;  %vm1019_vm6 = vweird.f32 %v1293_v4  ;;  %v1295_v63 = vpop.eup %1294 }
 0xccd   :  { %vm1020_vm8 = vmor %vm1018_vm7, %vm1019_vm6  ;;  %v1297_v9 = vpop.eup %1296 }
 0xcce   :  { %v1015_v57 = vsub.f32 1.0, %v1014_v56  ;;  %v1039_v18 = vadd.f32 1.0, %v1297_v9 }
 0xcd0   :  { %v1016_v59 = vmul.f32 %v1293_v4, %v1015_v57  ;;  %1298 = vrcp.f32 %v1039_v18  ;;  %v1051_v16 = vand.u32 2147483648, %v1039_v18  ;;  %vm1045_vm12 = vweird.f32 %v1039_v18 }
 0xcd1   :  { %v1049_v19 = vand.u32 2147483647, %v1039_v18 }
 0xcd2   :  { %v1017_v61 = vadd.f32 %v1293_v4, %v1016_v59  ;;  %v1052_v23 = vor.u32 1.1754944e-38, %v1051_v16 }
 0xcd3   :  { %vm1050_vm14 = vcmp.eq.f32.partialorder %v1049_v19, 8.507059e+37 }
 0xcd4   :  { %v1021_v62 = vsel %vm1020_vm8, %v1293_v4, %v1017_v61 }
 0xcd5   :  { %v1026_v0 = vsel %vm1023_vm9, %v1025_v41, %v1021_v62 }
 0xcd6   :  { %v1030_v2 = vmul.f32 %v1295_v63, %v1026_v0  ;;  %v1299_v17 = vpop.eup %1298  ;;  %v1028_v12 = vmul.f32 %v1026_v0, %v1667_v42  ;;  %v1072_v42 = vld [vmem:[#allocation3 + $0x180] sm:$0xff] }
 0xcd7   :  { %v1041_v6 = vmul.f32 %v1299_v17, %v1039_v18  ;;  %vm1046_vm11 = vweird.f32 %v1299_v17  ;;  %1118 = vmatpush.msrb.mxu3 %v1072_v42 }
 0xcd8   :  { %1032 = vrot.lane.b32.xlu0 %v1030_v2, %s1332_s0  ;;  %vm1047_vm13 = vmor %vm1045_vm12, %vm1046_vm11 }
 0xcd9   :  { %v1042_v8 = vsub.f32 1.0, %v1041_v6  ;;  %1119 = vmatpush.msrb.mxu3 %v1071_v44 }
 0xcdb   :  { %v1043_v10 = vmul.f32 %v1299_v17, %v1042_v8  ;;  %1120 = vmatpush.msrb.mxu3 %v1070_v45 }
 0xcdd   :  { %v1044_v15 = vadd.f32 %v1299_v17, %v1043_v10  ;;  %1121 = vmatpush.msrb.mxu3 %v1069_v46 }
 0xcdf   :  { %v1048_v43 = vsel %vm1047_vm13, %v1299_v17, %v1044_v15  ;;  %1122 = vmatpush.msrb.mxu3 %v1068_v48 }
 0xce0   :  { %v1053_v27 = vsel %vm1050_vm14, %v1052_v23, %v1048_v43 }
 0xce1   :  { %1123 = vmatpush.msrb.mxu3 %v1067_v49 }
 0xce3   :  { %1124 = vmatpush.msrb.mxu3 %v1066_v50 }
 0xd4a   :  { %v1033_v13 = vpop.permute.xlu0 %1032 }
 0xd4b   :  { %v1035_v14 = vadd.f32 %v1033_v13, %v1028_v12 }
 0xd4d   :  { %1300 = vtanh.f32 %v1035_v14 }
 0xd53   :  { %v1301_v26 = vpop.eup %1300 }
 0xd54   :  { %v1056_v28 = vmul.f32 %v1301_v26, %v1053_v27 }
 0xd56   :  { %1084 = vrot.lane.b32.xlu1 %v1056_v28, %s1332_s0 }
 0xdc8   :  { %v1085_v47 = vpop.permute.xlu1 %1084 }
 0xdc9   :  { %1187 = vmatmul.msk.f32.vlgmr.msra.gmra.mxu2 %vm192_vm10, %v1085_v47 }
 0xe4c   :  { %v1105_v33 = vpop.f32.mrf.mxu2 }
 0xe4d   :  { %v1106_v39 = vadd.f32 %v1105_v33, %v1065_v51 }
 0xe4f   :  { %v1108_v52 = vmax.f32 %v1106_v39, 0.0 }
 0xe51   :  { %1125 = vmatmul.f32.vlgmr.msrb.gmra.mxu3 %v1108_v52 }
 0xed4   :  { %v1126_v54 = vpop.f32.mrf.mxu3 }
 0xed5   :  { %v1127_v30 = vadd.f32 %v1126_v54, %v1082_v53 }
 0xed7   :  { %1129 = vst [vmem:[%s1684_s2] sm:$0xff] %v1127_v30 }
 0xed8   :  { %1134 = vsyncpa [#allocation4], 1 }

</bundles_post_ra>
